<compile_context>
chip_gen: v5e
topology: v5e:2x2
jax: 0.10.0
libtpu: 0.0.40
codegen_flags: <defaults>
</compile_context>

<pallas_src>
import functools

import numpy as np
import jax
import jax.numpy as jnp
from jax.experimental import pallas as pl
from jax.experimental.pallas import tpu as pltpu


def _round_up(x: int, m: int) -> int:
    return (x + m - 1) // m * m


def _cdiv(x: int, m: int) -> int:
    return (x + m - 1) // m


# ---------------------------------------------------------------------------
# Pallas kernel: multinomial-with-replacement via inverse-CDF counting.
#   u_ref   : (n_rows, 128) f32  one trial per SUBLANE row, value replicated
#                                 across all 128 lanes (done outside the kernel)
#   cdf_ref : (TR, 128)     f32  lane-dense inclusive-CDF tile
#                                 (padded classes hold 2.0 -> never counted)
#   out_ref : (n_rows, 128) i32  per-trial / per-lane partial hit counts;
#                                 resident accumulator across the class axis
# grid = (2, class_blocks): axis 0 "parallel" = disjoint class halves (both
# v7x TensorCores busy), axis 1 "arbitrary" = class reduction.
# ---------------------------------------------------------------------------
def _multinomial_count_kernel(u_ref, cdf_ref, out_ref, *, n_trial_rows):
    c = pl.program_id(1)

    @pl.when(c == 0)
    def _init():
        out_ref[...] = jnp.zeros_like(out_ref)

    cdf = cdf_ref[...]                                      # (TR, 128), lane-dense
    for t in range(n_trial_rows):                           # static unroll (small)
        u_t = u_ref[t:t + 1, :]                             # (1, 128): u_t in every lane
        hits = (cdf <= u_t).astype(jnp.int32)               # (TR, 128), no jnp.where
        out_ref[t:t + 1, :] = out_ref[t:t + 1, :] + jnp.sum(
            hits, axis=0, keepdims=True)                    # per-lane partial counts


def _draw_lane_counts(u_rep, cdf_lane, tile_rows):
    n_rows = u_rep.shape[0]
    n_split, rows_per_split, _ = cdf_lane.shape
    grid = (n_split, rows_per_split // tile_rows)
    return pl.pallas_call(
        functools.partial(_multinomial_count_kernel, n_trial_rows=n_rows),
        grid=grid,
        in_specs=[
            pl.BlockSpec((n_rows, 128), lambda s, c: (0, 0)),              # uniforms
            pl.BlockSpec((None, tile_rows, 128), lambda s, c: (s, c, 0)),  # CDF tile
        ],
        out_specs=pl.BlockSpec((None, n_rows, 128), lambda s, c: (s, 0, 0)),
        out_shape=jax.ShapeDtypeStruct((n_split, n_rows, 128), jnp.int32),
        compiler_params=pltpu.CompilerParams(
            dimension_semantics=("parallel", "arbitrary")),
    )(u_rep, cdf_lane)


# ---------------------------------------------------------------------------
# JAX-side module mirroring LogUniformSampler
# ---------------------------------------------------------------------------
def _log_uniform_probs_f64(max_id: int, min_id: int = 0) -> np.ndarray:
    log_indices = np.log(np.arange(1.0, max_id - min_id + 2.0, dtype=np.float64))
    probs = (log_indices[1:] - log_indices[:-1]) / log_indices[-1]
    if min_id > 0:
        probs = np.concatenate([np.zeros((min_id,), np.float64), probs], axis=0)
    return probs                                            # (max_id,), float64


class LogUniformSampler:
    """P(class) = (log(class + 2) - log(class + 1)) / log(max_id + 1)."""

    def __init__(self, max_n_samples, max_id, min_id=0, unique_sampling=True,
                 n_samples_multiplier_before_unique=2):
        if max_id <= 0:
            raise ValueError("max_id must be a positive integer.")
        if max_n_samples <= 0:
            raise ValueError("n_sample must be a positive integer.")
        self.max_id = max_id
        self.unique_sampling = unique_sampling
        self.max_n_samples = max_n_samples
        self.n_sample = max_n_samples
        if self.unique_sampling:
            self.n_sample = int(self.n_sample * n_samples_multiplier_before_unique)

        # One-time constant transforms: float64 numpy at init (no kernel needed).
        probs64 = _log_uniform_probs_f64(max_id, min_id)
        self.dist = jnp.asarray(probs64, jnp.float32)
        # Literal translation of the torch reference expression
        #   (-(-dist.double().log1p_() * n_sample).expm1_()).float()
        self.unique_sampling_dist = jnp.asarray(
            -np.expm1(-np.log1p(probs64) * float(self.n_sample)), jnp.float32)

        # Inclusive CDF in float64 (avoids f32 cumsum drift at very large max_id),
        # cast to f32 and laid out lane-dense: (2, rows_per_split, 128).
        cdf64 = np.cumsum(probs64)
        n_split = 2                                    # one class half per v7x TC
        rows_total = _cdiv(max_id, 128)
        rows_per_split = _round_up(_cdiv(rows_total, n_split), 8)
        tile_rows = min(rows_per_split, 256)           # <= 32K classes per grid step
        rows_per_split = _round_up(rows_per_split, tile_rows)
        p_pad = n_split * rows_per_split * 128
        cdf_pad = np.full((p_pad,), 2.0, np.float32)   # padded classes never counted
        cdf_pad[:max_id] = cdf64.astype(np.float32)
        self.cdf_lane = jnp.asarray(cdf_pad.reshape(n_split, rows_per_split, 128))
        self._tile_rows = tile_rows

        # One trial per sublane row, padded to a multiple of 8.
        # TODO(synk): for very large n_sample (>~512) the static trial unroll in
        # the kernel should itself be tiled over an extra grid axis.
        self._n_rows = _round_up(self.n_sample, 8)

    def __call__(self, labels, key):
        return self.sample(labels, key)

    def sample(self, labels, key):
        labels = jnp.asarray(labels).reshape(-1).astype(jnp.int32)
        if labels.size == 0:
            raise ValueError("Labels must not be an empty tensor.")

        # Inverse-CDF sampling needs just one uniform per trial; replicate each
        # across the 128 lanes once, outside the kernel (no in-kernel broadcasts).
        u = jax.random.uniform(key, (self._n_rows,), dtype=jnp.float32)
        u_rep = jnp.broadcast_to(u[:, None], (self._n_rows, 128))

        lane_counts = _draw_lane_counts(u_rep, self.cdf_lane, self._tile_rows)
        counts = jnp.sum(lane_counts, axis=(0, 2))           # (n_rows,) int32
        # Clamp against fp rounding in the CDF tail, drop padded trial rows.
        samples = jnp.minimum(counts, self.max_id - 1)[: self.n_sample]

        # TODO(synk): torch returns a variable-length unique(); fixed-shape JAX
        # pads/truncates to max_n_samples (fill_value=0, the head class) instead.
        neg_samples = jnp.unique(samples, size=self.max_n_samples, fill_value=0)

        dist = self.unique_sampling_dist if self.unique_sampling else self.dist
        # Single fused O(N) gather for labels + negatives.
        probs = jnp.take(dist, jnp.concatenate([labels, neg_samples]), axis=0)
        true_probs = probs[: labels.shape[0]]
        samples_probs = probs[labels.shape[0]:]
        return neg_samples, true_probs, samples_probs


if __name__ == "__main__":
    key = jax.random.PRNGKey(0)
    max_id = 1000
    batch = 8
    sampler = LogUniformSampler(max_n_samples=16, max_id=max_id)

    labels = jax.random.randint(jax.random.fold_in(key, 1), (batch,), 0, max_id,
                                dtype=jnp.int32)

    neg_samples, true_probs, samp_probs = sampler(labels, key)
    jax.block_until_ready((neg_samples, true_probs, samp_probs))

    assert neg_samples.shape == (16,) and neg_samples.dtype == jnp.int32
    assert true_probs.shape == (batch,) and true_probs.dtype == jnp.float32
    assert samp_probs.shape == (16,) and samp_probs.dtype == jnp.float32
    assert bool(jnp.all(neg_samples >= 0)) and bool(jnp.all(neg_samples < max_id))
    assert bool(jnp.all(true_probs > 0.0)) and bool(jnp.all(true_probs <= 1.0))
    assert bool(jnp.all(samp_probs > 0.0)) and bool(jnp.all(samp_probs <= 1.0))
    print("KERNEL_OK")
</pallas_src>

<mosaic_0001>
module attributes {stable_mosaic.version = 11 : i64} {
  func.func @_multinomial_count_kernel(%arg0: i32, %arg1: i32, %arg2: memref<32x128xf32, #tpu.memory_space<vmem>>, %arg3: memref<1x8x128xf32, #tpu.memory_space<vmem>>, %arg4: memref<1x32x128xi32, #tpu.memory_space<vmem>>) attributes {dimension_semantics = [#tpu.dimension_semantics<parallel>, #tpu.dimension_semantics<arbitrary>], iteration_bounds = array<i64: 2, 1>, scalar_prefetch = 0 : i64, scratch_operands = 0 : i64, tpu.core_type = #tpu.core_type<tc>, window_params = [{pipeline_mode = #tpu.pipeline_mode<synchronous>, transform_indices = @transform_0, window_bounds = array<i64: 32, 128>}, {transform_indices = @transform_1, window_bounds = array<i64: 1, 8, 128>}, {transform_indices = @transform_2, window_bounds = array<i64: 1, 32, 128>}]} {
    %c0_i32 = arith.constant 0 : i32
    %0 = arith.cmpi eq, %arg1, %c0_i32 : i32
    %1 = arith.extui %0 : i1 to i32
    %c0_i32_0 = arith.constant 0 : i32
    %2 = arith.cmpi ne, %1, %c0_i32_0 : i32
    scf.if %2 {
      %c0_i32_259 = arith.constant 0 : i32
      %389 = vector.broadcast %c0_i32_259 : i32 to vector<32x128xi32>
      %c0_260 = arith.constant 0 : index
      %c0_261 = arith.constant 0 : index
      %c0_262 = arith.constant 0 : index
      %390 = vector.load %arg4[%c0_260, %c0_261, %c0_262] : memref<1x32x128xi32, #tpu.memory_space<vmem>>, vector<1x32x128xi32>
      %391 = vector.shape_cast %390 : vector<1x32x128xi32> to vector<32x128xi32>
      %392 = vector.shape_cast %389 : vector<32x128xi32> to vector<1x32x128xi32>
      tpu.vector_store %arg4[%c0_260, %c0_261, %c0_262], %392 {strides = array<i32>} : memref<1x32x128xi32, #tpu.memory_space<vmem>>, vector<1x32x128xi32>,
    } else {
    }
    %c0 = arith.constant 0 : index
    %c0_1 = arith.constant 0 : index
    %c0_2 = arith.constant 0 : index
    %3 = vector.load %arg3[%c0, %c0_1, %c0_2] : memref<1x8x128xf32, #tpu.memory_space<vmem>>, vector<1x8x128xf32>
    %4 = vector.shape_cast %3 : vector<1x8x128xf32> to vector<8x128xf32>
    %c0_3 = arith.constant 0 : index
    %c0_4 = arith.constant 0 : index
    %5 = vector.load %arg2[%c0_3, %c0_4] : memref<32x128xf32, #tpu.memory_space<vmem>>, vector<1x128xf32>
    %6 = vector.broadcast %5 : vector<1x128xf32> to vector<8x128xf32>
    %7 = arith.cmpf ole, %4, %6 : vector<8x128xf32>
    %8 = arith.extui %7 : vector<8x128xi1> to vector<8x128xi32>
    %c0_5 = arith.constant 0 : index
    %c0_6 = arith.constant 0 : index
    %c0_7 = arith.constant 0 : index
    %9 = vector.load %arg4[%c0_5, %c0_6, %c0_7] : memref<1x32x128xi32, #tpu.memory_space<vmem>>, vector<1x1x128xi32>
    %10 = vector.shape_cast %9 : vector<1x1x128xi32> to vector<1x128xi32>
    %cst = arith.constant dense<0> : vector<128xi32>
    %11 = vector.multi_reduction <add>, %8, %cst [0] : vector<8x128xi32> to vector<128xi32>
    %12 = vector.shape_cast %11 : vector<128xi32> to vector<1x128xi32>
    %13 = arith.addi %10, %12 : vector<1x128xi32>
    %c0_8 = arith.constant 0 : index
    %c0_9 = arith.constant 0 : index
    %c0_10 = arith.constant 0 : index
    %14 = vector.load %arg4[%c0_8, %c0_9, %c0_10] : memref<1x32x128xi32, #tpu.memory_space<vmem>>, vector<1x1x128xi32>
    %15 = vector.shape_cast %14 : vector<1x1x128xi32> to vector<1x128xi32>
    %16 = vector.shape_cast %13 : vector<1x128xi32> to vector<1x1x128xi32>
    tpu.vector_store %arg4[%c0_8, %c0_9, %c0_10], %16 {strides = array<i32>} : memref<1x32x128xi32, #tpu.memory_space<vmem>>, vector<1x1x128xi32>,
    %c1 = arith.constant 1 : index
    %c0_11 = arith.constant 0 : index
    %17 = vector.load %arg2[%c1, %c0_11] : memref<32x128xf32, #tpu.memory_space<vmem>>, vector<1x128xf32>
    %18 = vector.broadcast %17 : vector<1x128xf32> to vector<8x128xf32>
    %19 = arith.cmpf ole, %4, %18 : vector<8x128xf32>
    %20 = arith.extui %19 : vector<8x128xi1> to vector<8x128xi32>
    %c0_12 = arith.constant 0 : index
    %c1_13 = arith.constant 1 : index
    %c0_14 = arith.constant 0 : index
    %21 = vector.load %arg4[%c0_12, %c1_13, %c0_14] : memref<1x32x128xi32, #tpu.memory_space<vmem>>, vector<1x1x128xi32>
    %22 = vector.shape_cast %21 : vector<1x1x128xi32> to vector<1x128xi32>
    %cst_15 = arith.constant dense<0> : vector<128xi32>
    %23 = vector.multi_reduction <add>, %20, %cst_15 [0] : vector<8x128xi32> to vector<128xi32>
    %24 = vector.shape_cast %23 : vector<128xi32> to vector<1x128xi32>
    %25 = arith.addi %22, %24 : vector<1x128xi32>
    %c0_16 = arith.constant 0 : index
    %c1_17 = arith.constant 1 : index
    %c0_18 = arith.constant 0 : index
    %26 = vector.load %arg4[%c0_16, %c1_17, %c0_18] : memref<1x32x128xi32, #tpu.memory_space<vmem>>, vector<1x1x128xi32>
    %27 = vector.shape_cast %26 : vector<1x1x128xi32> to vector<1x128xi32>
    %28 = vector.shape_cast %25 : vector<1x128xi32> to vector<1x1x128xi32>
    tpu.vector_store %arg4[%c0_16, %c1_17, %c0_18], %28 {strides = array<i32>} : memref<1x32x128xi32, #tpu.memory_space<vmem>>, vector<1x1x128xi32>,
    %c2 = arith.constant 2 : index
    %c0_19 = arith.constant 0 : index
    %29 = vector.load %arg2[%c2, %c0_19] : memref<32x128xf32, #tpu.memory_space<vmem>>, vector<1x128xf32>
    %30 = vector.broadcast %29 : vector<1x128xf32> to vector<8x128xf32>
    %31 = arith.cmpf ole, %4, %30 : vector<8x128xf32>
    %32 = arith.extui %31 : vector<8x128xi1> to vector<8x128xi32>
    %c0_20 = arith.constant 0 : index
    %c2_21 = arith.constant 2 : index
    %c0_22 = arith.constant 0 : index
    %33 = vector.load %arg4[%c0_20, %c2_21, %c0_22] : memref<1x32x128xi32, #tpu.memory_space<vmem>>, vector<1x1x128xi32>
    %34 = vector.shape_cast %33 : vector<1x1x128xi32> to vector<1x128xi32>
    %cst_23 = arith.constant dense<0> : vector<128xi32>
    %35 = vector.multi_reduction <add>, %32, %cst_23 [0] : vector<8x128xi32> to vector<128xi32>
    %36 = vector.shape_cast %35 : vector<128xi32> to vector<1x128xi32>
    %37 = arith.addi %34, %36 : vector<1x128xi32>
    %c0_24 = arith.constant 0 : index
    %c2_25 = arith.constant 2 : index
    %c0_26 = arith.constant 0 : index
    %38 = vector.load %arg4[%c0_24, %c2_25, %c0_26] : memref<1x32x128xi32, #tpu.memory_space<vmem>>, vector<1x1x128xi32>
    %39 = vector.shape_cast %38 : vector<1x1x128xi32> to vector<1x128xi32>
    %40 = vector.shape_cast %37 : vector<1x128xi32> to vector<1x1x128xi32>
    tpu.vector_store %arg4[%c0_24, %c2_25, %c0_26], %40 {strides = array<i32>} : memref<1x32x128xi32, #tpu.memory_space<vmem>>, vector<1x1x128xi32>,
    %c3 = arith.constant 3 : index
    %c0_27 = arith.constant 0 : index
    %41 = vector.load %arg2[%c3, %c0_27] : memref<32x128xf32, #tpu.memory_space<vmem>>, vector<1x128xf32>
    %42 = vector.broadcast %41 : vector<1x128xf32> to vector<8x128xf32>
    %43 = arith.cmpf ole, %4, %42 : vector<8x128xf32>
    %44 = arith.extui %43 : vector<8x128xi1> to vector<8x128xi32>
    %c0_28 = arith.constant 0 : index
    %c3_29 = arith.constant 3 : index
    %c0_30 = arith.constant 0 : index
    %45 = vector.load %arg4[%c0_28, %c3_29, %c0_30] : memref<1x32x128xi32, #tpu.memory_space<vmem>>, vector<1x1x128xi32>
    %46 = vector.shape_cast %45 : vector<1x1x128xi32> to vector<1x128xi32>
    %cst_31 = arith.constant dense<0> : vector<128xi32>
    %47 = vector.multi_reduction <add>, %44, %cst_31 [0] : vector<8x128xi32> to vector<128xi32>
    %48 = vector.shape_cast %47 : vector<128xi32> to vector<1x128xi32>
    %49 = arith.addi %46, %48 : vector<1x128xi32>
    %c0_32 = arith.constant 0 : index
    %c3_33 = arith.constant 3 : index
    %c0_34 = arith.constant 0 : index
    %50 = vector.load %arg4[%c0_32, %c3_33, %c0_34] : memref<1x32x128xi32, #tpu.memory_space<vmem>>, vector<1x1x128xi32>
    %51 = vector.shape_cast %50 : vector<1x1x128xi32> to vector<1x128xi32>
    %52 = vector.shape_cast %49 : vector<1x128xi32> to vector<1x1x128xi32>
    tpu.vector_store %arg4[%c0_32, %c3_33, %c0_34], %52 {strides = array<i32>} : memref<1x32x128xi32, #tpu.memory_space<vmem>>, vector<1x1x128xi32>,
    %c4 = arith.constant 4 : index
    %c0_35 = arith.constant 0 : index
    %53 = vector.load %arg2[%c4, %c0_35] : memref<32x128xf32, #tpu.memory_space<vmem>>, vector<1x128xf32>
    %54 = vector.broadcast %53 : vector<1x128xf32> to vector<8x128xf32>
    %55 = arith.cmpf ole, %4, %54 : vector<8x128xf32>
    %56 = arith.extui %55 : vector<8x128xi1> to vector<8x128xi32>
    %c0_36 = arith.constant 0 : index
    %c4_37 = arith.constant 4 : index
    %c0_38 = arith.constant 0 : index
    %57 = vector.load %arg4[%c0_36, %c4_37, %c0_38] : memref<1x32x128xi32, #tpu.memory_space<vmem>>, vector<1x1x128xi32>
    %58 = vector.shape_cast %57 : vector<1x1x128xi32> to vector<1x128xi32>
    %cst_39 = arith.constant dense<0> : vector<128xi32>
    %59 = vector.multi_reduction <add>, %56, %cst_39 [0] : vector<8x128xi32> to vector<128xi32>
    %60 = vector.shape_cast %59 : vector<128xi32> to vector<1x128xi32>
    %61 = arith.addi %58, %60 : vector<1x128xi32>
    %c0_40 = arith.constant 0 : index
    %c4_41 = arith.constant 4 : index
    %c0_42 = arith.constant 0 : index
    %62 = vector.load %arg4[%c0_40, %c4_41, %c0_42] : memref<1x32x128xi32, #tpu.memory_space<vmem>>, vector<1x1x128xi32>
    %63 = vector.shape_cast %62 : vector<1x1x128xi32> to vector<1x128xi32>
    %64 = vector.shape_cast %61 : vector<1x128xi32> to vector<1x1x128xi32>
    tpu.vector_store %arg4[%c0_40, %c4_41, %c0_42], %64 {strides = array<i32>} : memref<1x32x128xi32, #tpu.memory_space<vmem>>, vector<1x1x128xi32>,
    %c5 = arith.constant 5 : index
    %c0_43 = arith.constant 0 : index
    %65 = vector.load %arg2[%c5, %c0_43] : memref<32x128xf32, #tpu.memory_space<vmem>>, vector<1x128xf32>
    %66 = vector.broadcast %65 : vector<1x128xf32> to vector<8x128xf32>
    %67 = arith.cmpf ole, %4, %66 : vector<8x128xf32>
    %68 = arith.extui %67 : vector<8x128xi1> to vector<8x128xi32>
    %c0_44 = arith.constant 0 : index
    %c5_45 = arith.constant 5 : index
    %c0_46 = arith.constant 0 : index
    %69 = vector.load %arg4[%c0_44, %c5_45, %c0_46] : memref<1x32x128xi32, #tpu.memory_space<vmem>>, vector<1x1x128xi32>
    %70 = vector.shape_cast %69 : vector<1x1x128xi32> to vector<1x128xi32>
    %cst_47 = arith.constant dense<0> : vector<128xi32>
    %71 = vector.multi_reduction <add>, %68, %cst_47 [0] : vector<8x128xi32> to vector<128xi32>
    %72 = vector.shape_cast %71 : vector<128xi32> to vector<1x128xi32>
    %73 = arith.addi %70, %72 : vector<1x128xi32>
    %c0_48 = arith.constant 0 : index
    %c5_49 = arith.constant 5 : index
    %c0_50 = arith.constant 0 : index
    %74 = vector.load %arg4[%c0_48, %c5_49, %c0_50] : memref<1x32x128xi32, #tpu.memory_space<vmem>>, vector<1x1x128xi32>
    %75 = vector.shape_cast %74 : vector<1x1x128xi32> to vector<1x128xi32>
    %76 = vector.shape_cast %73 : vector<1x128xi32> to vector<1x1x128xi32>
    tpu.vector_store %arg4[%c0_48, %c5_49, %c0_50], %76 {strides = array<i32>} : memref<1x32x128xi32, #tpu.memory_space<vmem>>, vector<1x1x128xi32>,
    %c6 = arith.constant 6 : index
    %c0_51 = arith.constant 0 : index
    %77 = vector.load %arg2[%c6, %c0_51] : memref<32x128xf32, #tpu.memory_space<vmem>>, vector<1x128xf32>
    %78 = vector.broadcast %77 : vector<1x128xf32> to vector<8x128xf32>
    %79 = arith.cmpf ole, %4, %78 : vector<8x128xf32>
    %80 = arith.extui %79 : vector<8x128xi1> to vector<8x128xi32>
    %c0_52 = arith.constant 0 : index
    %c6_53 = arith.constant 6 : index
    %c0_54 = arith.constant 0 : index
    %81 = vector.load %arg4[%c0_52, %c6_53, %c0_54] : memref<1x32x128xi32, #tpu.memory_space<vmem>>, vector<1x1x128xi32>
    %82 = vector.shape_cast %81 : vector<1x1x128xi32> to vector<1x128xi32>
    %cst_55 = arith.constant dense<0> : vector<128xi32>
    %83 = vector.multi_reduction <add>, %80, %cst_55 [0] : vector<8x128xi32> to vector<128xi32>
    %84 = vector.shape_cast %83 : vector<128xi32> to vector<1x128xi32>
    %85 = arith.addi %82, %84 : vector<1x128xi32>
    %c0_56 = arith.constant 0 : index
    %c6_57 = arith.constant 6 : index
    %c0_58 = arith.constant 0 : index
    %86 = vector.load %arg4[%c0_56, %c6_57, %c0_58] : memref<1x32x128xi32, #tpu.memory_space<vmem>>, vector<1x1x128xi32>
    %87 = vector.shape_cast %86 : vector<1x1x128xi32> to vector<1x128xi32>
    %88 = vector.shape_cast %85 : vector<1x128xi32> to vector<1x1x128xi32>
    tpu.vector_store %arg4[%c0_56, %c6_57, %c0_58], %88 {strides = array<i32>} : memref<1x32x128xi32, #tpu.memory_space<vmem>>, vector<1x1x128xi32>,
    %c7 = arith.constant 7 : index
    %c0_59 = arith.constant 0 : index
    %89 = vector.load %arg2[%c7, %c0_59] : memref<32x128xf32, #tpu.memory_space<vmem>>, vector<1x128xf32>
    %90 = vector.broadcast %89 : vector<1x128xf32> to vector<8x128xf32>
    %91 = arith.cmpf ole, %4, %90 : vector<8x128xf32>
    %92 = arith.extui %91 : vector<8x128xi1> to vector<8x128xi32>
    %c0_60 = arith.constant 0 : index
    %c7_61 = arith.constant 7 : index
    %c0_62 = arith.constant 0 : index
    %93 = vector.load %arg4[%c0_60, %c7_61, %c0_62] : memref<1x32x128xi32, #tpu.memory_space<vmem>>, vector<1x1x128xi32>
    %94 = vector.shape_cast %93 : vector<1x1x128xi32> to vector<1x128xi32>
    %cst_63 = arith.constant dense<0> : vector<128xi32>
    %95 = vector.multi_reduction <add>, %92, %cst_63 [0] : vector<8x128xi32> to vector<128xi32>
    %96 = vector.shape_cast %95 : vector<128xi32> to vector<1x128xi32>
    %97 = arith.addi %94, %96 : vector<1x128xi32>
    %c0_64 = arith.constant 0 : index
    %c7_65 = arith.constant 7 : index
    %c0_66 = arith.constant 0 : index
    %98 = vector.load %arg4[%c0_64, %c7_65, %c0_66] : memref<1x32x128xi32, #tpu.memory_space<vmem>>, vector<1x1x128xi32>
    %99 = vector.shape_cast %98 : vector<1x1x128xi32> to vector<1x128xi32>
    %100 = vector.shape_cast %97 : vector<1x128xi32> to vector<1x1x128xi32>
    tpu.vector_store %arg4[%c0_64, %c7_65, %c0_66], %100 {strides = array<i32>} : memref<1x32x128xi32, #tpu.memory_space<vmem>>, vector<1x1x128xi32>,
    %c8 = arith.constant 8 : index
    %c0_67 = arith.constant 0 : index
    %101 = vector.load %arg2[%c8, %c0_67] : memref<32x128xf32, #tpu.memory_space<vmem>>, vector<1x128xf32>
    %102 = vector.broadcast %101 : vector<1x128xf32> to vector<8x128xf32>
    %103 = arith.cmpf ole, %4, %102 : vector<8x128xf32>
    %104 = arith.extui %103 : vector<8x128xi1> to vector<8x128xi32>
    %c0_68 = arith.constant 0 : index
    %c8_69 = arith.constant 8 : index
    %c0_70 = arith.constant 0 : index
    %105 = vector.load %arg4[%c0_68, %c8_69, %c0_70] : memref<1x32x128xi32, #tpu.memory_space<vmem>>, vector<1x1x128xi32>
    %106 = vector.shape_cast %105 : vector<1x1x128xi32> to vector<1x128xi32>
    %cst_71 = arith.constant dense<0> : vector<128xi32>
    %107 = vector.multi_reduction <add>, %104, %cst_71 [0] : vector<8x128xi32> to vector<128xi32>
    %108 = vector.shape_cast %107 : vector<128xi32> to vector<1x128xi32>
    %109 = arith.addi %106, %108 : vector<1x128xi32>
    %c0_72 = arith.constant 0 : index
    %c8_73 = arith.constant 8 : index
    %c0_74 = arith.constant 0 : index
    %110 = vector.load %arg4[%c0_72, %c8_73, %c0_74] : memref<1x32x128xi32, #tpu.memory_space<vmem>>, vector<1x1x128xi32>
    %111 = vector.shape_cast %110 : vector<1x1x128xi32> to vector<1x128xi32>
    %112 = vector.shape_cast %109 : vector<1x128xi32> to vector<1x1x128xi32>
    tpu.vector_store %arg4[%c0_72, %c8_73, %c0_74], %112 {strides = array<i32>} : memref<1x32x128xi32, #tpu.memory_space<vmem>>, vector<1x1x128xi32>,
    %c9 = arith.constant 9 : index
    %c0_75 = arith.constant 0 : index
    %113 = vector.load %arg2[%c9, %c0_75] : memref<32x128xf32, #tpu.memory_space<vmem>>, vector<1x128xf32>
    %114 = vector.broadcast %113 : vector<1x128xf32> to vector<8x128xf32>
    %115 = arith.cmpf ole, %4, %114 : vector<8x128xf32>
    %116 = arith.extui %115 : vector<8x128xi1> to vector<8x128xi32>
    %c0_76 = arith.constant 0 : index
    %c9_77 = arith.constant 9 : index
    %c0_78 = arith.constant 0 : index
    %117 = vector.load %arg4[%c0_76, %c9_77, %c0_78] : memref<1x32x128xi32, #tpu.memory_space<vmem>>, vector<1x1x128xi32>
    %118 = vector.shape_cast %117 : vector<1x1x128xi32> to vector<1x128xi32>
    %cst_79 = arith.constant dense<0> : vector<128xi32>
    %119 = vector.multi_reduction <add>, %116, %cst_79 [0] : vector<8x128xi32> to vector<128xi32>
    %120 = vector.shape_cast %119 : vector<128xi32> to vector<1x128xi32>
    %121 = arith.addi %118, %120 : vector<1x128xi32>
    %c0_80 = arith.constant 0 : index
    %c9_81 = arith.constant 9 : index
    %c0_82 = arith.constant 0 : index
    %122 = vector.load %arg4[%c0_80, %c9_81, %c0_82] : memref<1x32x128xi32, #tpu.memory_space<vmem>>, vector<1x1x128xi32>
    %123 = vector.shape_cast %122 : vector<1x1x128xi32> to vector<1x128xi32>
    %124 = vector.shape_cast %121 : vector<1x128xi32> to vector<1x1x128xi32>
    tpu.vector_store %arg4[%c0_80, %c9_81, %c0_82], %124 {strides = array<i32>} : memref<1x32x128xi32, #tpu.memory_space<vmem>>, vector<1x1x128xi32>,
    %c10 = arith.constant 10 : index
    %c0_83 = arith.constant 0 : index
    %125 = vector.load %arg2[%c10, %c0_83] : memref<32x128xf32, #tpu.memory_space<vmem>>, vector<1x128xf32>
    %126 = vector.broadcast %125 : vector<1x128xf32> to vector<8x128xf32>
    %127 = arith.cmpf ole, %4, %126 : vector<8x128xf32>
    %128 = arith.extui %127 : vector<8x128xi1> to vector<8x128xi32>
    %c0_84 = arith.constant 0 : index
    %c10_85 = arith.constant 10 : index
    %c0_86 = arith.constant 0 : index
    %129 = vector.load %arg4[%c0_84, %c10_85, %c0_86] : memref<1x32x128xi32, #tpu.memory_space<vmem>>, vector<1x1x128xi32>
    %130 = vector.shape_cast %129 : vector<1x1x128xi32> to vector<1x128xi32>
    %cst_87 = arith.constant dense<0> : vector<128xi32>
    %131 = vector.multi_reduction <add>, %128, %cst_87 [0] : vector<8x128xi32> to vector<128xi32>
    %132 = vector.shape_cast %131 : vector<128xi32> to vector<1x128xi32>
    %133 = arith.addi %130, %132 : vector<1x128xi32>
    %c0_88 = arith.constant 0 : index
    %c10_89 = arith.constant 10 : index
    %c0_90 = arith.constant 0 : index
    %134 = vector.load %arg4[%c0_88, %c10_89, %c0_90] : memref<1x32x128xi32, #tpu.memory_space<vmem>>, vector<1x1x128xi32>
    %135 = vector.shape_cast %134 : vector<1x1x128xi32> to vector<1x128xi32>
    %136 = vector.shape_cast %133 : vector<1x128xi32> to vector<1x1x128xi32>
    tpu.vector_store %arg4[%c0_88, %c10_89, %c0_90], %136 {strides = array<i32>} : memref<1x32x128xi32, #tpu.memory_space<vmem>>, vector<1x1x128xi32>,
    %c11 = arith.constant 11 : index
    %c0_91 = arith.constant 0 : index
    %137 = vector.load %arg2[%c11, %c0_91] : memref<32x128xf32, #tpu.memory_space<vmem>>, vector<1x128xf32>
    %138 = vector.broadcast %137 : vector<1x128xf32> to vector<8x128xf32>
    %139 = arith.cmpf ole, %4, %138 : vector<8x128xf32>
    %140 = arith.extui %139 : vector<8x128xi1> to vector<8x128xi32>
    %c0_92 = arith.constant 0 : index
    %c11_93 = arith.constant 11 : index
    %c0_94 = arith.constant 0 : index
    %141 = vector.load %arg4[%c0_92, %c11_93, %c0_94] : memref<1x32x128xi32, #tpu.memory_space<vmem>>, vector<1x1x128xi32>
    %142 = vector.shape_cast %141 : vector<1x1x128xi32> to vector<1x128xi32>
    %cst_95 = arith.constant dense<0> : vector<128xi32>
    %143 = vector.multi_reduction <add>, %140, %cst_95 [0] : vector<8x128xi32> to vector<128xi32>
    %144 = vector.shape_cast %143 : vector<128xi32> to vector<1x128xi32>
    %145 = arith.addi %142, %144 : vector<1x128xi32>
    %c0_96 = arith.constant 0 : index
    %c11_97 = arith.constant 11 : index
    %c0_98 = arith.constant 0 : index
    %146 = vector.load %arg4[%c0_96, %c11_97, %c0_98] : memref<1x32x128xi32, #tpu.memory_space<vmem>>, vector<1x1x128xi32>
    %147 = vector.shape_cast %146 : vector<1x1x128xi32> to vector<1x128xi32>
    %148 = vector.shape_cast %145 : vector<1x128xi32> to vector<1x1x128xi32>
    tpu.vector_store %arg4[%c0_96, %c11_97, %c0_98], %148 {strides = array<i32>} : memref<1x32x128xi32, #tpu.memory_space<vmem>>, vector<1x1x128xi32>,
    %c12 = arith.constant 12 : index
    %c0_99 = arith.constant 0 : index
    %149 = vector.load %arg2[%c12, %c0_99] : memref<32x128xf32, #tpu.memory_space<vmem>>, vector<1x128xf32>
    %150 = vector.broadcast %149 : vector<1x128xf32> to vector<8x128xf32>
    %151 = arith.cmpf ole, %4, %150 : vector<8x128xf32>
    %152 = arith.extui %151 : vector<8x128xi1> to vector<8x128xi32>
    %c0_100 = arith.constant 0 : index
    %c12_101 = arith.constant 12 : index
    %c0_102 = arith.constant 0 : index
    %153 = vector.load %arg4[%c0_100, %c12_101, %c0_102] : memref<1x32x128xi32, #tpu.memory_space<vmem>>, vector<1x1x128xi32>
    %154 = vector.shape_cast %153 : vector<1x1x128xi32> to vector<1x128xi32>
    %cst_103 = arith.constant dense<0> : vector<128xi32>
    %155 = vector.multi_reduction <add>, %152, %cst_103 [0] : vector<8x128xi32> to vector<128xi32>
    %156 = vector.shape_cast %155 : vector<128xi32> to vector<1x128xi32>
    %157 = arith.addi %154, %156 : vector<1x128xi32>
    %c0_104 = arith.constant 0 : index
    %c12_105 = arith.constant 12 : index
    %c0_106 = arith.constant 0 : index
    %158 = vector.load %arg4[%c0_104, %c12_105, %c0_106] : memref<1x32x128xi32, #tpu.memory_space<vmem>>, vector<1x1x128xi32>
    %159 = vector.shape_cast %158 : vector<1x1x128xi32> to vector<1x128xi32>
    %160 = vector.shape_cast %157 : vector<1x128xi32> to vector<1x1x128xi32>
    tpu.vector_store %arg4[%c0_104, %c12_105, %c0_106], %160 {strides = array<i32>} : memref<1x32x128xi32, #tpu.memory_space<vmem>>, vector<1x1x128xi32>,
    %c13 = arith.constant 13 : index
    %c0_107 = arith.constant 0 : index
    %161 = vector.load %arg2[%c13, %c0_107] : memref<32x128xf32, #tpu.memory_space<vmem>>, vector<1x128xf32>
    %162 = vector.broadcast %161 : vector<1x128xf32> to vector<8x128xf32>
    %163 = arith.cmpf ole, %4, %162 : vector<8x128xf32>
    %164 = arith.extui %163 : vector<8x128xi1> to vector<8x128xi32>
    %c0_108 = arith.constant 0 : index
    %c13_109 = arith.constant 13 : index
    %c0_110 = arith.constant 0 : index
    %165 = vector.load %arg4[%c0_108, %c13_109, %c0_110] : memref<1x32x128xi32, #tpu.memory_space<vmem>>, vector<1x1x128xi32>
    %166 = vector.shape_cast %165 : vector<1x1x128xi32> to vector<1x128xi32>
    %cst_111 = arith.constant dense<0> : vector<128xi32>
    %167 = vector.multi_reduction <add>, %164, %cst_111 [0] : vector<8x128xi32> to vector<128xi32>
    %168 = vector.shape_cast %167 : vector<128xi32> to vector<1x128xi32>
    %169 = arith.addi %166, %168 : vector<1x128xi32>
    %c0_112 = arith.constant 0 : index
    %c13_113 = arith.constant 13 : index
    %c0_114 = arith.constant 0 : index
    %170 = vector.load %arg4[%c0_112, %c13_113, %c0_114] : memref<1x32x128xi32, #tpu.memory_space<vmem>>, vector<1x1x128xi32>
    %171 = vector.shape_cast %170 : vector<1x1x128xi32> to vector<1x128xi32>
    %172 = vector.shape_cast %169 : vector<1x128xi32> to vector<1x1x128xi32>
    tpu.vector_store %arg4[%c0_112, %c13_113, %c0_114], %172 {strides = array<i32>} : memref<1x32x128xi32, #tpu.memory_space<vmem>>, vector<1x1x128xi32>,
    %c14 = arith.constant 14 : index
    %c0_115 = arith.constant 0 : index
    %173 = vector.load %arg2[%c14, %c0_115] : memref<32x128xf32, #tpu.memory_space<vmem>>, vector<1x128xf32>
    %174 = vector.broadcast %173 : vector<1x128xf32> to vector<8x128xf32>
    %175 = arith.cmpf ole, %4, %174 : vector<8x128xf32>
    %176 = arith.extui %175 : vector<8x128xi1> to vector<8x128xi32>
    %c0_116 = arith.constant 0 : index
    %c14_117 = arith.constant 14 : index
    %c0_118 = arith.constant 0 : index
    %177 = vector.load %arg4[%c0_116, %c14_117, %c0_118] : memref<1x32x128xi32, #tpu.memory_space<vmem>>, vector<1x1x128xi32>
    %178 = vector.shape_cast %177 : vector<1x1x128xi32> to vector<1x128xi32>
    %cst_119 = arith.constant dense<0> : vector<128xi32>
    %179 = vector.multi_reduction <add>, %176, %cst_119 [0] : vector<8x128xi32> to vector<128xi32>
    %180 = vector.shape_cast %179 : vector<128xi32> to vector<1x128xi32>
    %181 = arith.addi %178, %180 : vector<1x128xi32>
    %c0_120 = arith.constant 0 : index
    %c14_121 = arith.constant 14 : index
    %c0_122 = arith.constant 0 : index
    %182 = vector.load %arg4[%c0_120, %c14_121, %c0_122] : memref<1x32x128xi32, #tpu.memory_space<vmem>>, vector<1x1x128xi32>
    %183 = vector.shape_cast %182 : vector<1x1x128xi32> to vector<1x128xi32>
    %184 = vector.shape_cast %181 : vector<1x128xi32> to vector<1x1x128xi32>
    tpu.vector_store %arg4[%c0_120, %c14_121, %c0_122], %184 {strides = array<i32>} : memref<1x32x128xi32, #tpu.memory_space<vmem>>, vector<1x1x128xi32>,
    %c15 = arith.constant 15 : index
    %c0_123 = arith.constant 0 : index
    %185 = vector.load %arg2[%c15, %c0_123] : memref<32x128xf32, #tpu.memory_space<vmem>>, vector<1x128xf32>
    %186 = vector.broadcast %185 : vector<1x128xf32> to vector<8x128xf32>
    %187 = arith.cmpf ole, %4, %186 : vector<8x128xf32>
    %188 = arith.extui %187 : vector<8x128xi1> to vector<8x128xi32>
    %c0_124 = arith.constant 0 : index
    %c15_125 = arith.constant 15 : index
    %c0_126 = arith.constant 0 : index
    %189 = vector.load %arg4[%c0_124, %c15_125, %c0_126] : memref<1x32x128xi32, #tpu.memory_space<vmem>>, vector<1x1x128xi32>
    %190 = vector.shape_cast %189 : vector<1x1x128xi32> to vector<1x128xi32>
    %cst_127 = arith.constant dense<0> : vector<128xi32>
    %191 = vector.multi_reduction <add>, %188, %cst_127 [0] : vector<8x128xi32> to vector<128xi32>
    %192 = vector.shape_cast %191 : vector<128xi32> to vector<1x128xi32>
    %193 = arith.addi %190, %192 : vector<1x128xi32>
    %c0_128 = arith.constant 0 : index
    %c15_129 = arith.constant 15 : index
    %c0_130 = arith.constant 0 : index
    %194 = vector.load %arg4[%c0_128, %c15_129, %c0_130] : memref<1x32x128xi32, #tpu.memory_space<vmem>>, vector<1x1x128xi32>
    %195 = vector.shape_cast %194 : vector<1x1x128xi32> to vector<1x128xi32>
    %196 = vector.shape_cast %193 : vector<1x128xi32> to vector<1x1x128xi32>
    tpu.vector_store %arg4[%c0_128, %c15_129, %c0_130], %196 {strides = array<i32>} : memref<1x32x128xi32, #tpu.memory_space<vmem>>, vector<1x1x128xi32>,
    %c16 = arith.constant 16 : index
    %c0_131 = arith.constant 0 : index
    %197 = vector.load %arg2[%c16, %c0_131] : memref<32x128xf32, #tpu.memory_space<vmem>>, vector<1x128xf32>
    %198 = vector.broadcast %197 : vector<1x128xf32> to vector<8x128xf32>
    %199 = arith.cmpf ole, %4, %198 : vector<8x128xf32>
    %200 = arith.extui %199 : vector<8x128xi1> to vector<8x128xi32>
    %c0_132 = arith.constant 0 : index
    %c16_133 = arith.constant 16 : index
    %c0_134 = arith.constant 0 : index
    %201 = vector.load %arg4[%c0_132, %c16_133, %c0_134] : memref<1x32x128xi32, #tpu.memory_space<vmem>>, vector<1x1x128xi32>
    %202 = vector.shape_cast %201 : vector<1x1x128xi32> to vector<1x128xi32>
    %cst_135 = arith.constant dense<0> : vector<128xi32>
    %203 = vector.multi_reduction <add>, %200, %cst_135 [0] : vector<8x128xi32> to vector<128xi32>
    %204 = vector.shape_cast %203 : vector<128xi32> to vector<1x128xi32>
    %205 = arith.addi %202, %204 : vector<1x128xi32>
    %c0_136 = arith.constant 0 : index
    %c16_137 = arith.constant 16 : index
    %c0_138 = arith.constant 0 : index
    %206 = vector.load %arg4[%c0_136, %c16_137, %c0_138] : memref<1x32x128xi32, #tpu.memory_space<vmem>>, vector<1x1x128xi32>
    %207 = vector.shape_cast %206 : vector<1x1x128xi32> to vector<1x128xi32>
    %208 = vector.shape_cast %205 : vector<1x128xi32> to vector<1x1x128xi32>
    tpu.vector_store %arg4[%c0_136, %c16_137, %c0_138], %208 {strides = array<i32>} : memref<1x32x128xi32, #tpu.memory_space<vmem>>, vector<1x1x128xi32>,
    %c17 = arith.constant 17 : index
    %c0_139 = arith.constant 0 : index
    %209 = vector.load %arg2[%c17, %c0_139] : memref<32x128xf32, #tpu.memory_space<vmem>>, vector<1x128xf32>
    %210 = vector.broadcast %209 : vector<1x128xf32> to vector<8x128xf32>
    %211 = arith.cmpf ole, %4, %210 : vector<8x128xf32>
    %212 = arith.extui %211 : vector<8x128xi1> to vector<8x128xi32>
    %c0_140 = arith.constant 0 : index
    %c17_141 = arith.constant 17 : index
    %c0_142 = arith.constant 0 : index
    %213 = vector.load %arg4[%c0_140, %c17_141, %c0_142] : memref<1x32x128xi32, #tpu.memory_space<vmem>>, vector<1x1x128xi32>
    %214 = vector.shape_cast %213 : vector<1x1x128xi32> to vector<1x128xi32>
    %cst_143 = arith.constant dense<0> : vector<128xi32>
    %215 = vector.multi_reduction <add>, %212, %cst_143 [0] : vector<8x128xi32> to vector<128xi32>
    %216 = vector.shape_cast %215 : vector<128xi32> to vector<1x128xi32>
    %217 = arith.addi %214, %216 : vector<1x128xi32>
    %c0_144 = arith.constant 0 : index
    %c17_145 = arith.constant 17 : index
    %c0_146 = arith.constant 0 : index
    %218 = vector.load %arg4[%c0_144, %c17_145, %c0_146] : memref<1x32x128xi32, #tpu.memory_space<vmem>>, vector<1x1x128xi32>
    %219 = vector.shape_cast %218 : vector<1x1x128xi32> to vector<1x128xi32>
    %220 = vector.shape_cast %217 : vector<1x128xi32> to vector<1x1x128xi32>
    tpu.vector_store %arg4[%c0_144, %c17_145, %c0_146], %220 {strides = array<i32>} : memref<1x32x128xi32, #tpu.memory_space<vmem>>, vector<1x1x128xi32>,
    %c18 = arith.constant 18 : index
    %c0_147 = arith.constant 0 : index
    %221 = vector.load %arg2[%c18, %c0_147] : memref<32x128xf32, #tpu.memory_space<vmem>>, vector<1x128xf32>
    %222 = vector.broadcast %221 : vector<1x128xf32> to vector<8x128xf32>
    %223 = arith.cmpf ole, %4, %222 : vector<8x128xf32>
    %224 = arith.extui %223 : vector<8x128xi1> to vector<8x128xi32>
    %c0_148 = arith.constant 0 : index
    %c18_149 = arith.constant 18 : index
    %c0_150 = arith.constant 0 : index
    %225 = vector.load %arg4[%c0_148, %c18_149, %c0_150] : memref<1x32x128xi32, #tpu.memory_space<vmem>>, vector<1x1x128xi32>
    %226 = vector.shape_cast %225 : vector<1x1x128xi32> to vector<1x128xi32>
    %cst_151 = arith.constant dense<0> : vector<128xi32>
    %227 = vector.multi_reduction <add>, %224, %cst_151 [0] : vector<8x128xi32> to vector<128xi32>
    %228 = vector.shape_cast %227 : vector<128xi32> to vector<1x128xi32>
    %229 = arith.addi %226, %228 : vector<1x128xi32>
    %c0_152 = arith.constant 0 : index
    %c18_153 = arith.constant 18 : index
    %c0_154 = arith.constant 0 : index
    %230 = vector.load %arg4[%c0_152, %c18_153, %c0_154] : memref<1x32x128xi32, #tpu.memory_space<vmem>>, vector<1x1x128xi32>
    %231 = vector.shape_cast %230 : vector<1x1x128xi32> to vector<1x128xi32>
    %232 = vector.shape_cast %229 : vector<1x128xi32> to vector<1x1x128xi32>
    tpu.vector_store %arg4[%c0_152, %c18_153, %c0_154], %232 {strides = array<i32>} : memref<1x32x128xi32, #tpu.memory_space<vmem>>, vector<1x1x128xi32>,
    %c19 = arith.constant 19 : index
    %c0_155 = arith.constant 0 : index
    %233 = vector.load %arg2[%c19, %c0_155] : memref<32x128xf32, #tpu.memory_space<vmem>>, vector<1x128xf32>
    %234 = vector.broadcast %233 : vector<1x128xf32> to vector<8x128xf32>
    %235 = arith.cmpf ole, %4, %234 : vector<8x128xf32>
    %236 = arith.extui %235 : vector<8x128xi1> to vector<8x128xi32>
    %c0_156 = arith.constant 0 : index
    %c19_157 = arith.constant 19 : index
    %c0_158 = arith.constant 0 : index
    %237 = vector.load %arg4[%c0_156, %c19_157, %c0_158] : memref<1x32x128xi32, #tpu.memory_space<vmem>>, vector<1x1x128xi32>
    %238 = vector.shape_cast %237 : vector<1x1x128xi32> to vector<1x128xi32>
    %cst_159 = arith.constant dense<0> : vector<128xi32>
    %239 = vector.multi_reduction <add>, %236, %cst_159 [0] : vector<8x128xi32> to vector<128xi32>
    %240 = vector.shape_cast %239 : vector<128xi32> to vector<1x128xi32>
    %241 = arith.addi %238, %240 : vector<1x128xi32>
    %c0_160 = arith.constant 0 : index
    %c19_161 = arith.constant 19 : index
    %c0_162 = arith.constant 0 : index
    %242 = vector.load %arg4[%c0_160, %c19_161, %c0_162] : memref<1x32x128xi32, #tpu.memory_space<vmem>>, vector<1x1x128xi32>
    %243 = vector.shape_cast %242 : vector<1x1x128xi32> to vector<1x128xi32>
    %244 = vector.shape_cast %241 : vector<1x128xi32> to vector<1x1x128xi32>
    tpu.vector_store %arg4[%c0_160, %c19_161, %c0_162], %244 {strides = array<i32>} : memref<1x32x128xi32, #tpu.memory_space<vmem>>, vector<1x1x128xi32>,
    %c20 = arith.constant 20 : index
    %c0_163 = arith.constant 0 : index
    %245 = vector.load %arg2[%c20, %c0_163] : memref<32x128xf32, #tpu.memory_space<vmem>>, vector<1x128xf32>
    %246 = vector.broadcast %245 : vector<1x128xf32> to vector<8x128xf32>
    %247 = arith.cmpf ole, %4, %246 : vector<8x128xf32>
    %248 = arith.extui %247 : vector<8x128xi1> to vector<8x128xi32>
    %c0_164 = arith.constant 0 : index
    %c20_165 = arith.constant 20 : index
    %c0_166 = arith.constant 0 : index
    %249 = vector.load %arg4[%c0_164, %c20_165, %c0_166] : memref<1x32x128xi32, #tpu.memory_space<vmem>>, vector<1x1x128xi32>
    %250 = vector.shape_cast %249 : vector<1x1x128xi32> to vector<1x128xi32>
    %cst_167 = arith.constant dense<0> : vector<128xi32>
    %251 = vector.multi_reduction <add>, %248, %cst_167 [0] : vector<8x128xi32> to vector<128xi32>
    %252 = vector.shape_cast %251 : vector<128xi32> to vector<1x128xi32>
    %253 = arith.addi %250, %252 : vector<1x128xi32>
    %c0_168 = arith.constant 0 : index
    %c20_169 = arith.constant 20 : index
    %c0_170 = arith.constant 0 : index
    %254 = vector.load %arg4[%c0_168, %c20_169, %c0_170] : memref<1x32x128xi32, #tpu.memory_space<vmem>>, vector<1x1x128xi32>
    %255 = vector.shape_cast %254 : vector<1x1x128xi32> to vector<1x128xi32>
    %256 = vector.shape_cast %253 : vector<1x128xi32> to vector<1x1x128xi32>
    tpu.vector_store %arg4[%c0_168, %c20_169, %c0_170], %256 {strides = array<i32>} : memref<1x32x128xi32, #tpu.memory_space<vmem>>, vector<1x1x128xi32>,
    %c21 = arith.constant 21 : index
    %c0_171 = arith.constant 0 : index
    %257 = vector.load %arg2[%c21, %c0_171] : memref<32x128xf32, #tpu.memory_space<vmem>>, vector<1x128xf32>
    %258 = vector.broadcast %257 : vector<1x128xf32> to vector<8x128xf32>
    %259 = arith.cmpf ole, %4, %258 : vector<8x128xf32>
    %260 = arith.extui %259 : vector<8x128xi1> to vector<8x128xi32>
    %c0_172 = arith.constant 0 : index
    %c21_173 = arith.constant 21 : index
    %c0_174 = arith.constant 0 : index
    %261 = vector.load %arg4[%c0_172, %c21_173, %c0_174] : memref<1x32x128xi32, #tpu.memory_space<vmem>>, vector<1x1x128xi32>
    %262 = vector.shape_cast %261 : vector<1x1x128xi32> to vector<1x128xi32>
    %cst_175 = arith.constant dense<0> : vector<128xi32>
    %263 = vector.multi_reduction <add>, %260, %cst_175 [0] : vector<8x128xi32> to vector<128xi32>
    %264 = vector.shape_cast %263 : vector<128xi32> to vector<1x128xi32>
    %265 = arith.addi %262, %264 : vector<1x128xi32>
    %c0_176 = arith.constant 0 : index
    %c21_177 = arith.constant 21 : index
    %c0_178 = arith.constant 0 : index
    %266 = vector.load %arg4[%c0_176, %c21_177, %c0_178] : memref<1x32x128xi32, #tpu.memory_space<vmem>>, vector<1x1x128xi32>
    %267 = vector.shape_cast %266 : vector<1x1x128xi32> to vector<1x128xi32>
    %268 = vector.shape_cast %265 : vector<1x128xi32> to vector<1x1x128xi32>
    tpu.vector_store %arg4[%c0_176, %c21_177, %c0_178], %268 {strides = array<i32>} : memref<1x32x128xi32, #tpu.memory_space<vmem>>, vector<1x1x128xi32>,
    %c22 = arith.constant 22 : index
    %c0_179 = arith.constant 0 : index
    %269 = vector.load %arg2[%c22, %c0_179] : memref<32x128xf32, #tpu.memory_space<vmem>>, vector<1x128xf32>
    %270 = vector.broadcast %269 : vector<1x128xf32> to vector<8x128xf32>
    %271 = arith.cmpf ole, %4, %270 : vector<8x128xf32>
    %272 = arith.extui %271 : vector<8x128xi1> to vector<8x128xi32>
    %c0_180 = arith.constant 0 : index
    %c22_181 = arith.constant 22 : index
    %c0_182 = arith.constant 0 : index
    %273 = vector.load %arg4[%c0_180, %c22_181, %c0_182] : memref<1x32x128xi32, #tpu.memory_space<vmem>>, vector<1x1x128xi32>
    %274 = vector.shape_cast %273 : vector<1x1x128xi32> to vector<1x128xi32>
    %cst_183 = arith.constant dense<0> : vector<128xi32>
    %275 = vector.multi_reduction <add>, %272, %cst_183 [0] : vector<8x128xi32> to vector<128xi32>
    %276 = vector.shape_cast %275 : vector<128xi32> to vector<1x128xi32>
    %277 = arith.addi %274, %276 : vector<1x128xi32>
    %c0_184 = arith.constant 0 : index
    %c22_185 = arith.constant 22 : index
    %c0_186 = arith.constant 0 : index
    %278 = vector.load %arg4[%c0_184, %c22_185, %c0_186] : memref<1x32x128xi32, #tpu.memory_space<vmem>>, vector<1x1x128xi32>
    %279 = vector.shape_cast %278 : vector<1x1x128xi32> to vector<1x128xi32>
    %280 = vector.shape_cast %277 : vector<1x128xi32> to vector<1x1x128xi32>
    tpu.vector_store %arg4[%c0_184, %c22_185, %c0_186], %280 {strides = array<i32>} : memref<1x32x128xi32, #tpu.memory_space<vmem>>, vector<1x1x128xi32>,
    %c23 = arith.constant 23 : index
    %c0_187 = arith.constant 0 : index
    %281 = vector.load %arg2[%c23, %c0_187] : memref<32x128xf32, #tpu.memory_space<vmem>>, vector<1x128xf32>
    %282 = vector.broadcast %281 : vector<1x128xf32> to vector<8x128xf32>
    %283 = arith.cmpf ole, %4, %282 : vector<8x128xf32>
    %284 = arith.extui %283 : vector<8x128xi1> to vector<8x128xi32>
    %c0_188 = arith.constant 0 : index
    %c23_189 = arith.constant 23 : index
    %c0_190 = arith.constant 0 : index
    %285 = vector.load %arg4[%c0_188, %c23_189, %c0_190] : memref<1x32x128xi32, #tpu.memory_space<vmem>>, vector<1x1x128xi32>
    %286 = vector.shape_cast %285 : vector<1x1x128xi32> to vector<1x128xi32>
    %cst_191 = arith.constant dense<0> : vector<128xi32>
    %287 = vector.multi_reduction <add>, %284, %cst_191 [0] : vector<8x128xi32> to vector<128xi32>
    %288 = vector.shape_cast %287 : vector<128xi32> to vector<1x128xi32>
    %289 = arith.addi %286, %288 : vector<1x128xi32>
    %c0_192 = arith.constant 0 : index
    %c23_193 = arith.constant 23 : index
    %c0_194 = arith.constant 0 : index
    %290 = vector.load %arg4[%c0_192, %c23_193, %c0_194] : memref<1x32x128xi32, #tpu.memory_space<vmem>>, vector<1x1x128xi32>
    %291 = vector.shape_cast %290 : vector<1x1x128xi32> to vector<1x128xi32>
    %292 = vector.shape_cast %289 : vector<1x128xi32> to vector<1x1x128xi32>
    tpu.vector_store %arg4[%c0_192, %c23_193, %c0_194], %292 {strides = array<i32>} : memref<1x32x128xi32, #tpu.memory_space<vmem>>, vector<1x1x128xi32>,
    %c24 = arith.constant 24 : index
    %c0_195 = arith.constant 0 : index
    %293 = vector.load %arg2[%c24, %c0_195] : memref<32x128xf32, #tpu.memory_space<vmem>>, vector<1x128xf32>
    %294 = vector.broadcast %293 : vector<1x128xf32> to vector<8x128xf32>
    %295 = arith.cmpf ole, %4, %294 : vector<8x128xf32>
    %296 = arith.extui %295 : vector<8x128xi1> to vector<8x128xi32>
    %c0_196 = arith.constant 0 : index
    %c24_197 = arith.constant 24 : index
    %c0_198 = arith.constant 0 : index
    %297 = vector.load %arg4[%c0_196, %c24_197, %c0_198] : memref<1x32x128xi32, #tpu.memory_space<vmem>>, vector<1x1x128xi32>
    %298 = vector.shape_cast %297 : vector<1x1x128xi32> to vector<1x128xi32>
    %cst_199 = arith.constant dense<0> : vector<128xi32>
    %299 = vector.multi_reduction <add>, %296, %cst_199 [0] : vector<8x128xi32> to vector<128xi32>
    %300 = vector.shape_cast %299 : vector<128xi32> to vector<1x128xi32>
    %301 = arith.addi %298, %300 : vector<1x128xi32>
    %c0_200 = arith.constant 0 : index
    %c24_201 = arith.constant 24 : index
    %c0_202 = arith.constant 0 : index
    %302 = vector.load %arg4[%c0_200, %c24_201, %c0_202] : memref<1x32x128xi32, #tpu.memory_space<vmem>>, vector<1x1x128xi32>
    %303 = vector.shape_cast %302 : vector<1x1x128xi32> to vector<1x128xi32>
    %304 = vector.shape_cast %301 : vector<1x128xi32> to vector<1x1x128xi32>
    tpu.vector_store %arg4[%c0_200, %c24_201, %c0_202], %304 {strides = array<i32>} : memref<1x32x128xi32, #tpu.memory_space<vmem>>, vector<1x1x128xi32>,
    %c25 = arith.constant 25 : index
    %c0_203 = arith.constant 0 : index
    %305 = vector.load %arg2[%c25, %c0_203] : memref<32x128xf32, #tpu.memory_space<vmem>>, vector<1x128xf32>
    %306 = vector.broadcast %305 : vector<1x128xf32> to vector<8x128xf32>
    %307 = arith.cmpf ole, %4, %306 : vector<8x128xf32>
    %308 = arith.extui %307 : vector<8x128xi1> to vector<8x128xi32>
    %c0_204 = arith.constant 0 : index
    %c25_205 = arith.constant 25 : index
    %c0_206 = arith.constant 0 : index
    %309 = vector.load %arg4[%c0_204, %c25_205, %c0_206] : memref<1x32x128xi32, #tpu.memory_space<vmem>>, vector<1x1x128xi32>
    %310 = vector.shape_cast %309 : vector<1x1x128xi32> to vector<1x128xi32>
    %cst_207 = arith.constant dense<0> : vector<128xi32>
    %311 = vector.multi_reduction <add>, %308, %cst_207 [0] : vector<8x128xi32> to vector<128xi32>
    %312 = vector.shape_cast %311 : vector<128xi32> to vector<1x128xi32>
    %313 = arith.addi %310, %312 : vector<1x128xi32>
    %c0_208 = arith.constant 0 : index
    %c25_209 = arith.constant 25 : index
    %c0_210 = arith.constant 0 : index
    %314 = vector.load %arg4[%c0_208, %c25_209, %c0_210] : memref<1x32x128xi32, #tpu.memory_space<vmem>>, vector<1x1x128xi32>
    %315 = vector.shape_cast %314 : vector<1x1x128xi32> to vector<1x128xi32>
    %316 = vector.shape_cast %313 : vector<1x128xi32> to vector<1x1x128xi32>
    tpu.vector_store %arg4[%c0_208, %c25_209, %c0_210], %316 {strides = array<i32>} : memref<1x32x128xi32, #tpu.memory_space<vmem>>, vector<1x1x128xi32>,
    %c26 = arith.constant 26 : index
    %c0_211 = arith.constant 0 : index
    %317 = vector.load %arg2[%c26, %c0_211] : memref<32x128xf32, #tpu.memory_space<vmem>>, vector<1x128xf32>
    %318 = vector.broadcast %317 : vector<1x128xf32> to vector<8x128xf32>
    %319 = arith.cmpf ole, %4, %318 : vector<8x128xf32>
    %320 = arith.extui %319 : vector<8x128xi1> to vector<8x128xi32>
    %c0_212 = arith.constant 0 : index
    %c26_213 = arith.constant 26 : index
    %c0_214 = arith.constant 0 : index
    %321 = vector.load %arg4[%c0_212, %c26_213, %c0_214] : memref<1x32x128xi32, #tpu.memory_space<vmem>>, vector<1x1x128xi32>
    %322 = vector.shape_cast %321 : vector<1x1x128xi32> to vector<1x128xi32>
    %cst_215 = arith.constant dense<0> : vector<128xi32>
    %323 = vector.multi_reduction <add>, %320, %cst_215 [0] : vector<8x128xi32> to vector<128xi32>
    %324 = vector.shape_cast %323 : vector<128xi32> to vector<1x128xi32>
    %325 = arith.addi %322, %324 : vector<1x128xi32>
    %c0_216 = arith.constant 0 : index
    %c26_217 = arith.constant 26 : index
    %c0_218 = arith.constant 0 : index
    %326 = vector.load %arg4[%c0_216, %c26_217, %c0_218] : memref<1x32x128xi32, #tpu.memory_space<vmem>>, vector<1x1x128xi32>
    %327 = vector.shape_cast %326 : vector<1x1x128xi32> to vector<1x128xi32>
    %328 = vector.shape_cast %325 : vector<1x128xi32> to vector<1x1x128xi32>
    tpu.vector_store %arg4[%c0_216, %c26_217, %c0_218], %328 {strides = array<i32>} : memref<1x32x128xi32, #tpu.memory_space<vmem>>, vector<1x1x128xi32>,
    %c27 = arith.constant 27 : index
    %c0_219 = arith.constant 0 : index
    %329 = vector.load %arg2[%c27, %c0_219] : memref<32x128xf32, #tpu.memory_space<vmem>>, vector<1x128xf32>
    %330 = vector.broadcast %329 : vector<1x128xf32> to vector<8x128xf32>
    %331 = arith.cmpf ole, %4, %330 : vector<8x128xf32>
    %332 = arith.extui %331 : vector<8x128xi1> to vector<8x128xi32>
    %c0_220 = arith.constant 0 : index
    %c27_221 = arith.constant 27 : index
    %c0_222 = arith.constant 0 : index
    %333 = vector.load %arg4[%c0_220, %c27_221, %c0_222] : memref<1x32x128xi32, #tpu.memory_space<vmem>>, vector<1x1x128xi32>
    %334 = vector.shape_cast %333 : vector<1x1x128xi32> to vector<1x128xi32>
    %cst_223 = arith.constant dense<0> : vector<128xi32>
    %335 = vector.multi_reduction <add>, %332, %cst_223 [0] : vector<8x128xi32> to vector<128xi32>
    %336 = vector.shape_cast %335 : vector<128xi32> to vector<1x128xi32>
    %337 = arith.addi %334, %336 : vector<1x128xi32>
    %c0_224 = arith.constant 0 : index
    %c27_225 = arith.constant 27 : index
    %c0_226 = arith.constant 0 : index
    %338 = vector.load %arg4[%c0_224, %c27_225, %c0_226] : memref<1x32x128xi32, #tpu.memory_space<vmem>>, vector<1x1x128xi32>
    %339 = vector.shape_cast %338 : vector<1x1x128xi32> to vector<1x128xi32>
    %340 = vector.shape_cast %337 : vector<1x128xi32> to vector<1x1x128xi32>
    tpu.vector_store %arg4[%c0_224, %c27_225, %c0_226], %340 {strides = array<i32>} : memref<1x32x128xi32, #tpu.memory_space<vmem>>, vector<1x1x128xi32>,
    %c28 = arith.constant 28 : index
    %c0_227 = arith.constant 0 : index
    %341 = vector.load %arg2[%c28, %c0_227] : memref<32x128xf32, #tpu.memory_space<vmem>>, vector<1x128xf32>
    %342 = vector.broadcast %341 : vector<1x128xf32> to vector<8x128xf32>
    %343 = arith.cmpf ole, %4, %342 : vector<8x128xf32>
    %344 = arith.extui %343 : vector<8x128xi1> to vector<8x128xi32>
    %c0_228 = arith.constant 0 : index
    %c28_229 = arith.constant 28 : index
    %c0_230 = arith.constant 0 : index
    %345 = vector.load %arg4[%c0_228, %c28_229, %c0_230] : memref<1x32x128xi32, #tpu.memory_space<vmem>>, vector<1x1x128xi32>
    %346 = vector.shape_cast %345 : vector<1x1x128xi32> to vector<1x128xi32>
    %cst_231 = arith.constant dense<0> : vector<128xi32>
    %347 = vector.multi_reduction <add>, %344, %cst_231 [0] : vector<8x128xi32> to vector<128xi32>
    %348 = vector.shape_cast %347 : vector<128xi32> to vector<1x128xi32>
    %349 = arith.addi %346, %348 : vector<1x128xi32>
    %c0_232 = arith.constant 0 : index
    %c28_233 = arith.constant 28 : index
    %c0_234 = arith.constant 0 : index
    %350 = vector.load %arg4[%c0_232, %c28_233, %c0_234] : memref<1x32x128xi32, #tpu.memory_space<vmem>>, vector<1x1x128xi32>
    %351 = vector.shape_cast %350 : vector<1x1x128xi32> to vector<1x128xi32>
    %352 = vector.shape_cast %349 : vector<1x128xi32> to vector<1x1x128xi32>
    tpu.vector_store %arg4[%c0_232, %c28_233, %c0_234], %352 {strides = array<i32>} : memref<1x32x128xi32, #tpu.memory_space<vmem>>, vector<1x1x128xi32>,
    %c29 = arith.constant 29 : index
    %c0_235 = arith.constant 0 : index
    %353 = vector.load %arg2[%c29, %c0_235] : memref<32x128xf32, #tpu.memory_space<vmem>>, vector<1x128xf32>
    %354 = vector.broadcast %353 : vector<1x128xf32> to vector<8x128xf32>
    %355 = arith.cmpf ole, %4, %354 : vector<8x128xf32>
    %356 = arith.extui %355 : vector<8x128xi1> to vector<8x128xi32>
    %c0_236 = arith.constant 0 : index
    %c29_237 = arith.constant 29 : index
    %c0_238 = arith.constant 0 : index
    %357 = vector.load %arg4[%c0_236, %c29_237, %c0_238] : memref<1x32x128xi32, #tpu.memory_space<vmem>>, vector<1x1x128xi32>
    %358 = vector.shape_cast %357 : vector<1x1x128xi32> to vector<1x128xi32>
    %cst_239 = arith.constant dense<0> : vector<128xi32>
    %359 = vector.multi_reduction <add>, %356, %cst_239 [0] : vector<8x128xi32> to vector<128xi32>
    %360 = vector.shape_cast %359 : vector<128xi32> to vector<1x128xi32>
    %361 = arith.addi %358, %360 : vector<1x128xi32>
    %c0_240 = arith.constant 0 : index
    %c29_241 = arith.constant 29 : index
    %c0_242 = arith.constant 0 : index
    %362 = vector.load %arg4[%c0_240, %c29_241, %c0_242] : memref<1x32x128xi32, #tpu.memory_space<vmem>>, vector<1x1x128xi32>
    %363 = vector.shape_cast %362 : vector<1x1x128xi32> to vector<1x128xi32>
    %364 = vector.shape_cast %361 : vector<1x128xi32> to vector<1x1x128xi32>
    tpu.vector_store %arg4[%c0_240, %c29_241, %c0_242], %364 {strides = array<i32>} : memref<1x32x128xi32, #tpu.memory_space<vmem>>, vector<1x1x128xi32>,
    %c30 = arith.constant 30 : index
    %c0_243 = arith.constant 0 : index
    %365 = vector.load %arg2[%c30, %c0_243] : memref<32x128xf32, #tpu.memory_space<vmem>>, vector<1x128xf32>
    %366 = vector.broadcast %365 : vector<1x128xf32> to vector<8x128xf32>
    %367 = arith.cmpf ole, %4, %366 : vector<8x128xf32>
    %368 = arith.extui %367 : vector<8x128xi1> to vector<8x128xi32>
    %c0_244 = arith.constant 0 : index
    %c30_245 = arith.constant 30 : index
    %c0_246 = arith.constant 0 : index
    %369 = vector.load %arg4[%c0_244, %c30_245, %c0_246] : memref<1x32x128xi32, #tpu.memory_space<vmem>>, vector<1x1x128xi32>
    %370 = vector.shape_cast %369 : vector<1x1x128xi32> to vector<1x128xi32>
    %cst_247 = arith.constant dense<0> : vector<128xi32>
    %371 = vector.multi_reduction <add>, %368, %cst_247 [0] : vector<8x128xi32> to vector<128xi32>
    %372 = vector.shape_cast %371 : vector<128xi32> to vector<1x128xi32>
    %373 = arith.addi %370, %372 : vector<1x128xi32>
    %c0_248 = arith.constant 0 : index
    %c30_249 = arith.constant 30 : index
    %c0_250 = arith.constant 0 : index
    %374 = vector.load %arg4[%c0_248, %c30_249, %c0_250] : memref<1x32x128xi32, #tpu.memory_space<vmem>>, vector<1x1x128xi32>
    %375 = vector.shape_cast %374 : vector<1x1x128xi32> to vector<1x128xi32>
    %376 = vector.shape_cast %373 : vector<1x128xi32> to vector<1x1x128xi32>
    tpu.vector_store %arg4[%c0_248, %c30_249, %c0_250], %376 {strides = array<i32>} : memref<1x32x128xi32, #tpu.memory_space<vmem>>, vector<1x1x128xi32>,
    %c31 = arith.constant 31 : index
    %c0_251 = arith.constant 0 : index
    %377 = vector.load %arg2[%c31, %c0_251] : memref<32x128xf32, #tpu.memory_space<vmem>>, vector<1x128xf32>
    %378 = vector.broadcast %377 : vector<1x128xf32> to vector<8x128xf32>
    %379 = arith.cmpf ole, %4, %378 : vector<8x128xf32>
    %380 = arith.extui %379 : vector<8x128xi1> to vector<8x128xi32>
    %c0_252 = arith.constant 0 : index
    %c31_253 = arith.constant 31 : index
    %c0_254 = arith.constant 0 : index
    %381 = vector.load %arg4[%c0_252, %c31_253, %c0_254] : memref<1x32x128xi32, #tpu.memory_space<vmem>>, vector<1x1x128xi32>
    %382 = vector.shape_cast %381 : vector<1x1x128xi32> to vector<1x128xi32>
    %cst_255 = arith.constant dense<0> : vector<128xi32>
    %383 = vector.multi_reduction <add>, %380, %cst_255 [0] : vector<8x128xi32> to vector<128xi32>
    %384 = vector.shape_cast %383 : vector<128xi32> to vector<1x128xi32>
    %385 = arith.addi %382, %384 : vector<1x128xi32>
    %c0_256 = arith.constant 0 : index
    %c31_257 = arith.constant 31 : index
    %c0_258 = arith.constant 0 : index
    %386 = vector.load %arg4[%c0_256, %c31_257, %c0_258] : memref<1x32x128xi32, #tpu.memory_space<vmem>>, vector<1x1x128xi32>
    %387 = vector.shape_cast %386 : vector<1x1x128xi32> to vector<1x128xi32>
    %388 = vector.shape_cast %385 : vector<1x128xi32> to vector<1x1x128xi32>
    tpu.vector_store %arg4[%c0_256, %c31_257, %c0_258], %388 {strides = array<i32>} : memref<1x32x128xi32, #tpu.memory_space<vmem>>, vector<1x1x128xi32>,
    return
  }
  func.func @transform_0(%arg0: i32, %arg1: i32) -> (i32, i32) {
    %c0_i32 = arith.constant 0 : i32
    %c0_i32_0 = arith.constant 0 : i32
    %c0_i32_1 = arith.constant 0 : i32
    return %c0_i32, %c0_i32_0 : i32, i32
  }
  func.func @transform_1(%arg0: i32, %arg1: i32) -> (i32, i32, i32) {
    %c0_i32 = arith.constant 0 : i32
    %c0_i32_0 = arith.constant 0 : i32
    return %arg0, %arg1, %c0_i32 : i32, i32, i32
  }
  func.func @transform_2(%arg0: i32, %arg1: i32) -> (i32, i32, i32) {
    %c0_i32 = arith.constant 0 : i32
    %c0_i32_0 = arith.constant 0 : i32
    %c0_i32_1 = arith.constant 0 : i32
    return %arg0, %c0_i32, %c0_i32_0 : i32, i32, i32
  }
}

</mosaic_0001>

<bundles_post_ra>
// kernel: tpu_custom_call.1
= control target key start
LH: loop header
LB: loop body
LE: loop exit
PB: predicated region body
PF: predicated region fallthrough
CT: control target
= control target key end

     0   :  { %7 = vsyncpa [#allocation3], 0  ;;  %s1309_s0 = inlined_call_operand.hbm [shape: f32[32,128], index: 0, kind: input, shape index: {}]   ;;  %s1310_s1 = inlined_call_operand.hbm [shape: f32[2,8,128], index: 1, kind: input, shape index: {}]   ;;  %s1311_s2 = inlined_call_operand.hbm [shape: s32[2,32,128], index: 2, kind: output, shape index: {}]  }
   0x1   :  { %8 = vsyncpa [#allocation6], 0 }
   0x2   :  { %10 = vsyncpa [#allocation6 + $0x1], 0 }
   0x3   :  { %11 = vsyncpa [#allocation4], 0 }
   0x4   :  { %13 = vsyncpa [#allocation4 + $0x1], 0  ;;  %s1024_s9 = smov 0   ;;  %s1026_s10 = smov 0  }
   0x5   :  { %s1028_s11 = smov 0   ;;  %s1030_s12 = smov 0  }
   0x6   :  { %s1032_s13 = smov 0   ;;  %s1034_s14 = smov 0  }
   0x7 LB: > { %s728_s15 = sadd.s32 4294967295, %s1001_s14   ;;  %p730_p0 = scmp.ge.s32.totalorder %s1001_s14, 1  ;;  %s1001_s14 = sphi %s1034_s14, %s19_s14   ;;  %s997_s13 = sphi %s1032_s13, %s1322_s13   ;;  %s993_s12 = sphi %s1030_s12, %s1321_s12   ;;  %s989_s11 = sphi %s1028_s11, %s1320_s11   ;;  %s985_s10 = sphi %s1026_s10, %s1319_s10   ;;  %s981_s9 = sphi %s1024_s9, %s1318_s9  }
   0x8   : > { %p1056_p1 = scmp.eq.s32.totalorder %s728_s15, 0  ;;  %p111_p2 = scmp.lt.s32.totalorder %s1001_s14, 3 }
   0x9   : > { %s122_s19 = sshll.u32 %s1309_s0, 4  ;;  %s1003_s21 = smov [#allocation2]   ;;  %s123_s19 = int_to_ptr.hbm [resolvable:$true] %s122_s19 }
   0xa   : > { %p1064_p3 = pnand %p730_p0, %p111_p2  ;;  %s124_s22 = sshll.u32 %s1003_s21, 4  ;;  %s125_s22 = int_to_ptr.vmem [resolvable:$true] %s124_s22 }
   0xb   : > { %p732_p6 = scmp.ge.s32.totalorder %s1001_s14, 2  ;;  %s1004_s23 = smov 128  }
   0xc   : > { %p753_p4 = pneg %p1064_p3  ;;  %s1005_s24 = smov 8  }
   0xd   : > { %s729_s25 = sadd.s32 4294967294, %s1001_s14   ;;  %s31_s26 = sadd.s32 1, %s997_s13 }
   0xe   : > { %p754_p5 = pnand %p753_p4, %p1056_p1  ;;  %s61_s27 = sadd.s32 1, %s989_s11 }
   0xf   : > { %p33_p7 = scmp.ge.s32.totalorder %s31_s26, 2  ;;  %p68_p8 = scmp.ne.s32.totalorder %s989_s11, %s985_s10 }
  0x10   : > { %756 = dma.hbm_to_vmem [thread:$0]  (!%p754_p5), %s123_s19, 512, %s125_s22, [#allocation3], %s1004_s23, %s1004_s23, %s1005_s24  }
  0x11   : > { %p69_p9 = scmp.eq.s32.totalorder %s1001_s14, 0  ;;  %p74_p10 = scmp.ne.s32.totalorder %s985_s10, %s981_s9 }
  0x12   : > { %s1324_s26 = smov (%p33_p7, %s31_s26), 0  ;;  %p98_p13 = scmp.eq.s32.totalorder %s728_s15, 1 }
  0x13   : > { %p1083_p11 = por %p69_p9, %p68_p8  ;;  %p1089_p12 = por %p1056_p1, %p74_p10 }
  0x14   : > { %s56_s30 = ssub.s32 %s997_s13, %s1324_s26  ;;  %p104_p2 = scmp.eq.s32.totalorder %s729_s25, 1 }
  0x15   : > { %p59_p0 = scmp.eq.s32.totalorder %s56_s30, 0  ;;  %p1095_p4 = por %p98_p13, %p68_p8 }
  0x16   : > { %p766_p5 = scmp.lt.s32.totalorder %s1001_s14, 2  ;;  %p1103_p7 = por %p104_p2, %p74_p10 }
  0x17   : > { %s1101_s4 = scalar_select %p59_p0, %s989_s11, %s61_s27  }
  0x18   : > { %s138_s6 = sand.u32 1, %s989_s11   ;;  %s734_s8 = sshll.u32 %s997_s13, 3 }
  0x19   : > { %s733_s7 = sshll.u32 %s138_s6, 3  ;;  %s147_s15 = scalar_lea.hbm %s1310_s1, %s734_s8 }
  0x1a   : > { %s142_s19 = scalar_lea.vmem [#allocation5], %s733_s7  ;;  %s149_s22 = sshll.u32 %s147_s15, 4  ;;  %s150_s22 = int_to_ptr.hbm [resolvable:$true] %s149_s22 }
  0x1b   : > { %s151_s21 = sshll.u32 %s142_s19, 4  ;;  %p758_p8 = pnand %p766_p5, %p1083_p11  ;;  %s152_s21 = int_to_ptr.vmem [resolvable:$true] %s151_s21 }
  0x1c   : > { %s139_s23 = scalar_lea.sflag [#allocation6], %s138_s6  ;;  %160 = sbr.rel (%p1064_p3) target bundleno = 126 (0x7e), region = 28 }
  0x1d   : > { %760 = dma.hbm_to_vmem [thread:$0]  (!%p758_p8), %s150_s22, 128, %s152_s21, %s139_s23  }
  0x21   : > { %968 = dma.done.wait (%p1056_p1), [#allocation3], 512  }
  0x22   : > { %970 = vsyncadd (%p1056_p1), [#allocation3], 4294966784  ;;  %s1121_s24 = sand.u32 1, %s985_s10  }
  0x23   : > { %s737_s25 = sshll.u32 %s1121_s24, 3  ;;  %s168_s27 = scalar_lea.sflag [#allocation6], %s1121_s24 }
  0x24   : > { %s171_s28 = scalar_lea.vmem [#allocation5], %s737_s25 }
  0x25   : > { %972 = dma.done.wait (%p1089_p12), %s168_s27, 128  }
  0x26   : > { %974 = vsyncadd (%p1089_p12), %s168_s27, 4294967168  ;;  %s738_s20 = sshll.u32 %s1121_s24, 5  ;;  %v1006_v0 = vmov 0   ;;  %v1140_v1 = vld [vmem:[%s171_s28] sm:$0xff]  ;;  %s744_s16 = sshll.u32 %s993_s12, 5 }
  0x27   : > { %s1130_s30 = scalar_lea.vmem [#allocation7], %s738_s20  ;;  %v823_v2 = vld [vmem:[#allocation2] ss:$0 sm:$0xff]  ;;  %v824_v3 = vld [vmem:[#allocation2 + $0x1] ss:$0 sm:$0xff]  ;;  %s630_s7 = scalar_lea.hbm %s1311_s2, %s744_s16 }
  0x28   : > { %197 = vst [vmem:[%s1130_s30] sm:$0xff] %v1006_v0  ;;  %vm204_vm0 = vcmp.le.f32.partialorder %v1140_v1, %v823_v2  ;;  %v825_v4 = vld [vmem:[#allocation2 + $0x2] ss:$0 sm:$0xff]  ;;  %vm217_vm1 = vcmp.le.f32.partialorder %v1140_v1, %v824_v3  ;;  %v826_v8 = vld [vmem:[#allocation2 + $0x3] ss:$0 sm:$0xff]  ;;  %v827_v11 = vld [vmem:[#allocation2 + $0x4] ss:$0 sm:$0xff] }
  0x29   : > { %198 = vst [vmem:[%s1130_s30 + $0x8] sm:$0xff] %v1006_v0  ;;  %v205_v5 = vsel %vm204_vm0, 1, %v1006_v0  ;;  %v218_v7 = vsel %vm217_vm1, 1, %v1006_v0  ;;  %vm230_vm2 = vcmp.le.f32.partialorder %v1140_v1, %v825_v4  ;;  %vm243_vm3 = vcmp.le.f32.partialorder %v1140_v1, %v826_v8  ;;  %v828_v16 = vld [vmem:[#allocation2 + $0x5] ss:$0 sm:$0xff]  ;;  %s631_s12 = sshll.u32 %s1130_s30, 4  ;;  %s632_s12 = int_to_ptr.vmem [resolvable:$true] %s631_s12 }
  0x2a   : > { %199 = vst [vmem:[%s1130_s30 + $0x10] sm:$0xff] %v1006_v0  ;;  %v207_v6 = vrot.slane %v205_v5, 4  ;;  %v220_v9 = vrot.slane %v218_v7, 4  ;;  %v231_v10 = vsel %vm230_vm2, 1, %v1006_v0  ;;  %v244_v15 = vsel %vm243_vm3, 1, %v1006_v0  ;;  %s633_s8 = sshll.u32 %s630_s7, 4  ;;  %s634_s8 = int_to_ptr.hbm [resolvable:$true] %s633_s8 }
  0x2b   : > { %200 = vst [vmem:[%s1130_s30 + $0x18] sm:$0xff] %v1006_v0  ;;  %v233_v13 = vrot.slane %v231_v10, 4  ;;  %vm256_vm4 = vcmp.le.f32.partialorder %v1140_v1, %v827_v11  ;;  %v246_v19 = vrot.slane %v244_v15, 4  ;;  %vm269_vm5 = vcmp.le.f32.partialorder %v1140_v1, %v828_v16  ;;  %v829_v23 = vld [vmem:[#allocation2 + $0x6] ss:$0 sm:$0xff]  ;;  %s619_s17 = scalar_lea.sflag [#allocation4], %s1121_s24 }
  0x2c   : > { %v208_v12 = vadd.s32 %v207_v6, %v205_v5  ;;  %v221_v14 = vadd.s32 %v220_v9, %v218_v7  ;;  %v257_v20 = vsel %vm256_vm4, 1, %v1006_v0  ;;  %v270_v27 = vsel %vm269_vm5, 1, %v1006_v0  ;;  %v830_v28 = vld [vmem:[#allocation2 + $0x7] ss:$0 sm:$0xff]  ;;  %v831_v45 = vld [vmem:[#allocation2 + $0x8] ss:$0 sm:$0xff] }
  0x2d   : > { %v234_v18 = vadd.s32 %v233_v13, %v231_v10  ;;  %v259_v22 = vrot.slane %v257_v20, 4  ;;  %v247_v26 = vadd.s32 %v246_v19, %v244_v15  ;;  %v272_v31 = vrot.slane %v270_v27, 4  ;;  %v832_v56 = vld [vmem:[#allocation2 + $0x9] ss:$0 sm:$0xff]  ;;  %v833_v4 = vld [vmem:[#allocation2 + $0xa] ss:$0 sm:$0xff] }
  0x2e   : > { %v209_v17 = vrot.slane %v208_v12, 2  ;;  %v222_v21 = vrot.slane %v221_v14, 2  ;;  %vm282_vm6 = vcmp.le.f32.partialorder %v1140_v1, %v829_v23  ;;  %vm295_vm7 = vcmp.le.f32.partialorder %v1140_v1, %v830_v28  ;;  %v834_v9 = vld [vmem:[#allocation2 + $0xb] ss:$0 sm:$0xff]  ;;  %v835_v13 = vld [vmem:[#allocation2 + $0xc] ss:$0 sm:$0xff] }
  0x2f   : > { %v235_v25 = vrot.slane %v234_v18, 2  ;;  %v260_v30 = vadd.s32 %v259_v22, %v257_v20  ;;  %v206_v32 = vld [vmem:[%s1130_s30] sm:$0x1]  ;;  %v248_v35 = vrot.slane %v247_v26, 2  ;;  %v283_v36 = vsel %vm282_vm6, 1, %v1006_v0  ;;  %s929_s18 = sshra.s32 %s634_s8, 4  ;;  %s930_s18 = int_to_ptr.hbm [resolvable:$true] %s929_s18 }
  0x30   : > { %v210_v24 = vadd.s32 %v209_v17, %v208_v12  ;;  %v223_v29 = vadd.s32 %v222_v21, %v221_v14  ;;  %v219_v37 = vld [vmem:[%s1130_s30 + $0x1] sm:$0x1]  ;;  %v273_v40 = vadd.s32 %v272_v31, %v270_v27  ;;  %v285_v41 = vrot.slane %v283_v36, 4  ;;  %v232_v47 = vld [vmem:[%s1130_s30 + $0x2] sm:$0x1]  ;;  %s931_s15 = scalar_lea.hbm %s930_s18, 32  ;;  %p936_p10 = scmp.lt.s32.totalorder %s930_s18, %s1311_s2 }
  0x31   : > { %v236_v34 = vadd.s32 %v235_v25, %v234_v18  ;;  %v261_v39 = vrot.slane %v260_v30, 2  ;;  %v249_v44 = vadd.s32 %v248_v35, %v247_v26  ;;  %v245_v53 = vld [vmem:[%s1130_s30 + $0x3] sm:$0x1]  ;;  %v296_v55 = vsel %vm295_vm7, 1, %v1006_v0  ;;  %v258_v58 = vld [vmem:[%s1130_s30 + $0x4] sm:$0x1]  ;;  %p932_p1 = scmp.ne.s32.totalorder %s930_s18, %s931_s15 }
  0x32   : > { %v211_v33 = vrot.slane %v210_v24, 1  ;;  %v224_v38 = vrot.slane %v223_v29, 1  ;;  %v274_v49 = vrot.slane %v273_v40, 2  ;;  %v286_v50 = vadd.s32 %v285_v41, %v283_v36  ;;  %v271_v2 = vld [vmem:[%s1130_s30 + $0x5] sm:$0x1]  ;;  %s935_s22 = scalar_lea.hbm %s1311_s2, 64 }
  0x33   : > { %v237_v43 = vrot.slane %v236_v34, 1  ;;  %v262_v48 = vadd.s32 %v261_v39, %v260_v30  ;;  %v250_v54 = vrot.slane %v249_v44, 1  ;;  %v298_v3 = vrot.slane %v296_v55, 4  ;;  %v836_v18 = vld [vmem:[#allocation2 + $0xd] ss:$0 sm:$0xff]  ;;  %p933_p3 = pnand %p932_p1, %p1095_p4  ;;  %p937_p11 = scmp.lt.s32.totalorder %s935_s22, %s931_s15 }
  0x34   : > { %v212_v42 = vadd.s32 %v211_v33, %v210_v24  ;;  %v225_v46 = vadd.s32 %v224_v38, %v223_v29  ;;  %v275_v60 = vadd.s32 %v274_v49, %v273_v40  ;;  %v287_v61 = vrot.slane %v286_v50, 2  ;;  %v284_v19 = vld [vmem:[%s1130_s30 + $0x6] sm:$0x1]  ;;  %v837_v30 = vld [vmem:[#allocation2 + $0xe] ss:$0 sm:$0xff] }
  0x35   : > { %v238_v52 = vadd.s32 %v237_v43, %v236_v34  ;;  %v263_v59 = vrot.slane %v262_v48, 1  ;;  %v251_v63 = vadd.s32 %v250_v54, %v249_v44  ;;  %vm308_vm8 = vcmp.le.f32.partialorder %v1140_v1, %v831_v45  ;;  %v297_v33 = vld [vmem:[%s1130_s30 + $0x7] sm:$0x1]  ;;  %v838_v45 = vld [vmem:[#allocation2 + $0xf] ss:$0 sm:$0xff]  ;;  %p934_p9 = pneg %p933_p3  ;;  %p938_p12 = por %p937_p11, %p936_p10 }
  0x36   : > { %v213_v51 = vadd.s32 %v212_v42, %v206_v32  ;;  %v226_v57 = vadd.s32 %v225_v46, %v219_v37  ;;  %v276_v6 = vrot.slane %v275_v60, 1  ;;  %v288_v7 = vadd.s32 %v287_v61, %v286_v50  ;;  %v310_v46 = vld [vmem:[%s1130_s30 + $0x8] sm:$0x1] }
  0x37   : > { %v239_v62 = vadd.s32 %v238_v52, %v232_v47  ;;  %v264_v5 = vadd.s32 %v263_v59, %v262_v48  ;;  %v309_v8 = vsel %vm308_vm8, 1, %v1006_v0  ;;  %v252_v10 = vadd.s32 %v251_v63, %v245_v53  ;;  %p939_p13 = pnand %p938_p12, %p934_p9 }
  0x38   : > { %214 = vst [vmem:[%s1130_s30] sm:$0x1] %v213_v51  ;;  %v299_v11 = vadd.s32 %v298_v3, %v296_v55  ;;  %v311_v12 = vrot.slane %v309_v8, 4  ;;  %vm321_vm9 = vcmp.le.f32.partialorder %v1140_v1, %v832_v56  ;;  %v277_v15 = vadd.s32 %v276_v6, %v275_v60  ;;  %v839_v55 = vld [vmem:[#allocation2 + $0x10] ss:$0 sm:$0xff]  ;;  %v323_v56 = vld [vmem:[%s1130_s30 + $0x9] sm:$0x1] }
  0x39   : > { %227 = vst [vmem:[%s1130_s30 + $0x1] sm:$0x1] %v226_v57  ;;  %v265_v14 = vadd.s32 %v264_v5, %v258_v58  ;;  %v289_v16 = vrot.slane %v288_v7, 1  ;;  %v322_v17 = vsel %vm321_vm9, 1, %v1006_v0  ;;  %vm334_vm10 = vcmp.le.f32.partialorder %v1140_v1, %v833_v4  ;;  %v336_v3 = vld [vmem:[%s1130_s30 + $0xa] sm:$0x1] }
  0x3a   : > { %240 = vst [vmem:[%s1130_s30 + $0x2] sm:$0x1] %v239_v62  ;;  %v300_v20 = vrot.slane %v299_v11, 2  ;;  %v312_v21 = vadd.s32 %v311_v12, %v309_v8  ;;  %v324_v22 = vrot.slane %v322_v17, 4  ;;  %v278_v23 = vadd.s32 %v277_v15, %v271_v2  ;;  %v840_v2 = vld [vmem:[#allocation2 + $0x11] ss:$0 sm:$0xff] }
  0x3b   : > { %253 = vst [vmem:[%s1130_s30 + $0x3] sm:$0x1] %v252_v10  ;;  %v290_v24 = vadd.s32 %v289_v16, %v288_v7  ;;  %v335_v25 = vsel %vm334_vm10, 1, %v1006_v0  ;;  %vm347_vm11 = vcmp.le.f32.partialorder %v1140_v1, %v834_v9  ;;  %vm360_vm12 = vcmp.le.f32.partialorder %v1140_v1, %v835_v13  ;;  %v349_v12 = vld [vmem:[%s1130_s30 + $0xb] sm:$0x1] }
  0x3c   : > { %266 = vst [vmem:[%s1130_s30 + $0x4] sm:$0x1] %v265_v14  ;;  %v301_v26 = vadd.s32 %v300_v20, %v299_v11  ;;  %v313_v27 = vrot.slane %v312_v21, 2  ;;  %v325_v28 = vadd.s32 %v324_v22, %v322_v17  ;;  %v337_v29 = vrot.slane %v335_v25, 4  ;;  %v841_v11 = vld [vmem:[#allocation2 + $0x12] ss:$0 sm:$0xff] }
  0x3d   : > { %279 = vst [vmem:[%s1130_s30 + $0x5] sm:$0x1] %v278_v23  ;;  %v291_v31 = vadd.s32 %v290_v24, %v284_v19  ;;  %v348_v32 = vsel %vm347_vm11, 1, %v1006_v0  ;;  %vm373_vm13 = vcmp.le.f32.partialorder %v1140_v1, %v836_v18  ;;  %v361_v39 = vsel %vm360_vm12, 1, %v1006_v0  ;;  %v362_v18 = vld [vmem:[%s1130_s30 + $0xc] sm:$0x1] }
  0x3e   : > { %v302_v34 = vrot.slane %v301_v26, 1  ;;  %v314_v35 = vadd.s32 %v313_v27, %v312_v21  ;;  %v326_v36 = vrot.slane %v325_v28, 2  ;;  %v338_v37 = vadd.s32 %v337_v29, %v335_v25  ;;  %v375_v23 = vld [vmem:[%s1130_s30 + $0xd] sm:$0x1] }
  0x3f   : > { %292 = vst [vmem:[%s1130_s30 + $0x6] sm:$0x1] %v291_v31  ;;  %v350_v38 = vrot.slane %v348_v32, 4  ;;  %v374_v40 = vsel %vm373_vm13, 1, %v1006_v0  ;;  %vm386_vm14 = vcmp.le.f32.partialorder %v1140_v1, %v837_v30  ;;  %v363_v48 = vrot.slane %v361_v39, 4 }
  0x40   : > { %v303_v41 = vadd.s32 %v302_v34, %v301_v26  ;;  %v315_v42 = vrot.slane %v314_v35, 1  ;;  %v327_v43 = vadd.s32 %v326_v36, %v325_v28  ;;  %v339_v44 = vrot.slane %v338_v37, 2  ;;  %v388_v26 = vld [vmem:[%s1130_s30 + $0xe] sm:$0x1]  ;;  %v842_v30 = vld [vmem:[#allocation2 + $0x13] ss:$0 sm:$0xff] }
  0x41   : > { %v351_v47 = vadd.s32 %v350_v38, %v348_v32  ;;  %v376_v49 = vrot.slane %v374_v40, 4  ;;  %v387_v50 = vsel %vm386_vm14, 1, %v1006_v0  ;;  %v364_v58 = vadd.s32 %v363_v48, %v361_v39 }
  0x42   : > { %v304_v51 = vadd.s32 %v303_v41, %v297_v33  ;;  %v316_v52 = vadd.s32 %v315_v42, %v314_v35  ;;  %v328_v53 = vrot.slane %v327_v43, 1  ;;  %v340_v54 = vadd.s32 %v339_v44, %v338_v37  ;;  %v843_v35 = vld [vmem:[#allocation2 + $0x14] ss:$0 sm:$0xff] }
  0x43   : > { %v352_v57 = vrot.slane %v351_v47, 2  ;;  %v377_v59 = vadd.s32 %v376_v49, %v374_v40  ;;  %v389_v60 = vrot.slane %v387_v50, 4  ;;  %vm399_vm15 = vcmp.le.f32.partialorder %v1140_v1, %v838_v45  ;;  %v844_v40 = vld [vmem:[#allocation2 + $0x15] ss:$0 sm:$0xff]  ;;  %v845_v45 = vld [vmem:[#allocation2 + $0x16] ss:$0 sm:$0xff] }
  0x44   : > { %305 = vst [vmem:[%s1130_s30 + $0x7] sm:$0x1] %v304_v51  ;;  %v317_v61 = vadd.s32 %v316_v52, %v310_v46  ;;  %v329_v62 = vadd.s32 %v328_v53, %v327_v43  ;;  %v341_v63 = vrot.slane %v340_v54, 1  ;;  %v365_v5 = vrot.slane %v364_v58, 2 }
  0x45   : > { %v353_v4 = vadd.s32 %v352_v57, %v351_v47  ;;  %v378_v6 = vrot.slane %v377_v59, 2  ;;  %v390_v7 = vadd.s32 %v389_v60, %v387_v50  ;;  %v400_v10 = vsel %vm399_vm15, 1, %v1006_v0  ;;  %v401_v50 = vld [vmem:[%s1130_s30 + $0xf] sm:$0x1]  ;;  %v414_v60 = vld [vmem:[%s1130_s30 + $0x10] sm:$0x1] }
  0x46   : > { %318 = vst [vmem:[%s1130_s30 + $0x8] sm:$0x1] %v317_v61  ;;  %v330_v8 = vadd.s32 %v329_v62, %v323_v56  ;;  %v342_v9 = vadd.s32 %v341_v63, %v340_v54  ;;  %vm412_vm0 = vcmp.le.f32.partialorder %v1140_v1, %v839_v55  ;;  %v366_v14 = vadd.s32 %v365_v5, %v364_v58 }
  0x47   : > { %v354_v13 = vrot.slane %v353_v4, 1  ;;  %v379_v15 = vadd.s32 %v378_v6, %v377_v59  ;;  %v391_v16 = vrot.slane %v390_v7, 2  ;;  %v402_v19 = vrot.slane %v400_v10, 4 }
  0x48   : > { %331 = vst [vmem:[%s1130_s30 + $0x9] sm:$0x1] %v330_v8  ;;  %v343_v17 = vadd.s32 %v342_v9, %v336_v3  ;;  %v413_v20 = vsel %vm412_vm0, 1, %v1006_v0  ;;  %vm425_vm1 = vcmp.le.f32.partialorder %v1140_v1, %v840_v2  ;;  %v367_v22 = vrot.slane %v366_v14, 1  ;;  %v846_v2 = vld [vmem:[#allocation2 + $0x17] ss:$0 sm:$0xff] }
  0x49   : > { %v355_v21 = vadd.s32 %v354_v13, %v353_v4  ;;  %v380_v24 = vrot.slane %v379_v15, 1  ;;  %v392_v25 = vadd.s32 %v391_v16, %v390_v7  ;;  %v403_v27 = vadd.s32 %v402_v19, %v400_v10  ;;  %v427_v9 = vld [vmem:[%s1130_s30 + $0x11] sm:$0x1]  ;;  %v440_v19 = vld [vmem:[%s1130_s30 + $0x12] sm:$0x1] }
  0x4a   : > { %344 = vst [vmem:[%s1130_s30 + $0xa] sm:$0x1] %v343_v17  ;;  %v415_v28 = vrot.slane %v413_v20, 4  ;;  %v426_v29 = vsel %vm425_vm1, 1, %v1006_v0  ;;  %vm438_vm2 = vcmp.le.f32.partialorder %v1140_v1, %v841_v11  ;;  %v368_v32 = vadd.s32 %v367_v22, %v366_v14 }
  0x4b   : > { %v356_v31 = vadd.s32 %v355_v21, %v349_v12  ;;  %v381_v33 = vadd.s32 %v380_v24, %v379_v15  ;;  %v393_v34 = vrot.slane %v392_v25, 1  ;;  %v404_v36 = vrot.slane %v403_v27, 2  ;;  %v847_v12 = vld [vmem:[#allocation2 + $0x18] ss:$0 sm:$0xff]  ;;  %v848_v21 = vld [vmem:[#allocation2 + $0x19] ss:$0 sm:$0xff] }
  0x4c   : > { %v416_v37 = vadd.s32 %v415_v28, %v413_v20  ;;  %v428_v38 = vrot.slane %v426_v29, 4  ;;  %v439_v39 = vsel %vm438_vm2, 1, %v1006_v0  ;;  %v369_v41 = vadd.s32 %v368_v32, %v362_v18 }
  0x4d   : > { %357 = vst [vmem:[%s1130_s30 + $0xb] sm:$0x1] %v356_v31  ;;  %v382_v42 = vadd.s32 %v381_v33, %v375_v23  ;;  %v394_v43 = vadd.s32 %v393_v34, %v392_v25  ;;  %v441_v44 = vrot.slane %v439_v39, 4  ;;  %v405_v46 = vadd.s32 %v404_v36, %v403_v27  ;;  %v453_v31 = vld [vmem:[%s1130_s30 + $0x13] sm:$0x1] }
  0x4e   : > { %v417_v47 = vrot.slane %v416_v37, 2  ;;  %v429_v48 = vadd.s32 %v428_v38, %v426_v29  ;;  %vm451_vm3 = vcmp.le.f32.partialorder %v1140_v1, %v842_v30  ;;  %370 = vst [vmem:[%s1130_s30 + $0xc] sm:$0x1] %v369_v41  ;;  %vm464_vm4 = vcmp.le.f32.partialorder %v1140_v1, %v843_v35  ;;  %v849_v29 = vld [vmem:[#allocation2 + $0x1a] ss:$0 sm:$0xff] }
  0x4f   : > { %v395_v49 = vadd.s32 %v394_v43, %v388_v26  ;;  %v442_v51 = vadd.s32 %v441_v44, %v439_v39  ;;  %v452_v52 = vsel %vm451_vm3, 1, %v1006_v0  ;;  %383 = vst [vmem:[%s1130_s30 + $0xd] sm:$0x1] %v382_v42  ;;  %v406_v53 = vrot.slane %v405_v46, 1  ;;  %v466_v36 = vld [vmem:[%s1130_s30 + $0x14] sm:$0x1] }
  0x50   : > { %v418_v54 = vadd.s32 %v417_v47, %v416_v37  ;;  %v430_v55 = vrot.slane %v429_v48, 2  ;;  %v454_v56 = vrot.slane %v452_v52, 4  ;;  %v465_v58 = vsel %vm464_vm4, 1, %v1006_v0  ;;  %v850_v39 = vld [vmem:[#allocation2 + $0x1b] ss:$0 sm:$0xff] }
  0x51   : > { %396 = vst [vmem:[%s1130_s30 + $0xe] sm:$0x1] %v395_v49  ;;  %v443_v57 = vrot.slane %v442_v51, 2  ;;  %vm477_vm5 = vcmp.le.f32.partialorder %v1140_v1, %v844_v40  ;;  %vm490_vm6 = vcmp.le.f32.partialorder %v1140_v1, %v845_v45  ;;  %v407_v59 = vadd.s32 %v406_v53, %v405_v46  ;;  %v479_v45 = vld [vmem:[%s1130_s30 + $0x15] sm:$0x1] }
  0x52   : > { %v419_v61 = vrot.slane %v418_v54, 1  ;;  %v431_v62 = vadd.s32 %v430_v55, %v429_v48  ;;  %v455_v63 = vadd.s32 %v454_v56, %v452_v52  ;;  %v467_v4 = vrot.slane %v465_v58, 4  ;;  %v492_v46 = vld [vmem:[%s1130_s30 + $0x16] sm:$0x1]  ;;  %v851_v53 = vld [vmem:[#allocation2 + $0x1c] ss:$0 sm:$0xff] }
  0x53   : > { %v444_v3 = vadd.s32 %v443_v57, %v442_v51  ;;  %v478_v5 = vsel %vm477_vm5, 1, %v1006_v0  ;;  %v491_v6 = vsel %vm490_vm6, 1, %v1006_v0  ;;  %v408_v7 = vadd.s32 %v407_v59, %v401_v50 }
  0x54   : > { %v420_v8 = vadd.s32 %v419_v61, %v418_v54  ;;  %v432_v10 = vrot.slane %v431_v62, 1  ;;  %v456_v11 = vrot.slane %v455_v63, 2  ;;  %v468_v14 = vadd.s32 %v467_v4, %v465_v58  ;;  %v852_v61 = vld [vmem:[#allocation2 + $0x1d] ss:$0 sm:$0xff] }
  0x55   : > { %v445_v13 = vrot.slane %v444_v3, 1  ;;  %v480_v15 = vrot.slane %v478_v5, 4  ;;  %v493_v16 = vrot.slane %v491_v6, 4  ;;  %409 = vst [vmem:[%s1130_s30 + $0xf] sm:$0x1] %v408_v7  ;;  %vm503_vm7 = vcmp.le.f32.partialorder %v1140_v1, %v846_v2 }
  0x56   : > { %v421_v17 = vadd.s32 %v420_v8, %v414_v60  ;;  %v433_v18 = vadd.s32 %v432_v10, %v431_v62  ;;  %v457_v20 = vadd.s32 %v456_v11, %v455_v63  ;;  %v469_v23 = vrot.slane %v468_v14, 2  ;;  %v853_v8 = vld [vmem:[#allocation2 + $0x1e] ss:$0 sm:$0xff] }
  0x57   : > { %v446_v22 = vadd.s32 %v445_v13, %v444_v3  ;;  %v481_v24 = vadd.s32 %v480_v15, %v478_v5  ;;  %v494_v25 = vadd.s32 %v493_v16, %v491_v6  ;;  %v504_v28 = vsel %vm503_vm7, 1, %v1006_v0 }
  0x58   : > { %422 = vst [vmem:[%s1130_s30 + $0x10] sm:$0x1] %v421_v17  ;;  %v434_v26 = vadd.s32 %v433_v18, %v427_v9  ;;  %v458_v27 = vrot.slane %v457_v20, 1  ;;  %vm516_vm8 = vcmp.le.f32.partialorder %v1140_v1, %v847_v12  ;;  %v470_v32 = vadd.s32 %v469_v23, %v468_v14  ;;  %v505_v12 = vld [vmem:[%s1130_s30 + $0x17] sm:$0x1] }
  0x59   : > { %v447_v30 = vadd.s32 %v446_v22, %v440_v19  ;;  %v482_v33 = vrot.slane %v481_v24, 2  ;;  %v495_v34 = vrot.slane %v494_v25, 2  ;;  %v506_v37 = vrot.slane %v504_v28, 4  ;;  %v518_v17 = vld [vmem:[%s1130_s30 + $0x18] sm:$0x1] }
  0x5a   : > { %435 = vst [vmem:[%s1130_s30 + $0x11] sm:$0x1] %v434_v26  ;;  %v459_v35 = vadd.s32 %v458_v27, %v457_v20  ;;  %v517_v38 = vsel %vm516_vm8, 1, %v1006_v0  ;;  %vm529_vm9 = vcmp.le.f32.partialorder %v1140_v1, %v848_v21  ;;  %v471_v40 = vrot.slane %v470_v32, 1 }
  0x5b   : > { %448 = vst [vmem:[%s1130_s30 + $0x12] sm:$0x1] %v447_v30  ;;  %v483_v41 = vadd.s32 %v482_v33, %v481_v24  ;;  %v496_v42 = vadd.s32 %v495_v34, %v494_v25  ;;  %v519_v43 = vrot.slane %v517_v38, 4  ;;  %v507_v47 = vadd.s32 %v506_v37, %v504_v28  ;;  %v854_v24 = vld [vmem:[#allocation2 + $0x1f] ss:$0 sm:$0xff] }
  0x5c   : > { %v460_v44 = vadd.s32 %v459_v35, %v453_v31  ;;  %v530_v48 = vsel %vm529_vm9, 1, %v1006_v0  ;;  %vm542_vm10 = vcmp.le.f32.partialorder %v1140_v1, %v849_v29  ;;  %v472_v49 = vadd.s32 %v471_v40, %v470_v32  ;;  %v531_v30 = vld [vmem:[%s1130_s30 + $0x19] sm:$0x1] }
  0x5d   : > { %v484_v50 = vrot.slane %v483_v41, 1  ;;  %v497_v51 = vrot.slane %v496_v42, 1  ;;  %v520_v52 = vadd.s32 %v519_v43, %v517_v38  ;;  %v508_v54 = vrot.slane %v507_v47, 2  ;;  %v544_v38 = vld [vmem:[%s1130_s30 + $0x1a] sm:$0x1] }
  0x5e   : > { %461 = vst [vmem:[%s1130_s30 + $0x13] sm:$0x1] %v460_v44  ;;  %v532_v55 = vrot.slane %v530_v48, 4  ;;  %v543_v56 = vsel %vm542_vm10, 1, %v1006_v0  ;;  %vm555_vm11 = vcmp.le.f32.partialorder %v1140_v1, %v850_v39  ;;  %v473_v57 = vadd.s32 %v472_v49, %v466_v36  ;;  %v557_v43 = vld [vmem:[%s1130_s30 + $0x1b] sm:$0x1] }
  0x5f   : > { %v485_v58 = vadd.s32 %v484_v50, %v483_v41  ;;  %v498_v59 = vadd.s32 %v497_v51, %v496_v42  ;;  %v521_v60 = vrot.slane %v520_v52, 2  ;;  %v509_v62 = vadd.s32 %v508_v54, %v507_v47 }
  0x60   : > { %v533_v63 = vadd.s32 %v532_v55, %v530_v48  ;;  %v545_v2 = vrot.slane %v543_v56, 4  ;;  %v556_v3 = vsel %vm555_vm11, 1, %v1006_v0  ;;  %474 = vst [vmem:[%s1130_s30 + $0x14] sm:$0x1] %v473_v57  ;;  %vm568_vm12 = vcmp.le.f32.partialorder %v1140_v1, %v851_v53  ;;  %v570_v53 = vld [vmem:[%s1130_s30 + $0x1c] sm:$0x1] }
  0x61   : > { %v486_v4 = vadd.s32 %v485_v58, %v479_v45  ;;  %v499_v5 = vadd.s32 %v498_v59, %v492_v46  ;;  %v522_v6 = vadd.s32 %v521_v60, %v520_v52  ;;  %v558_v7 = vrot.slane %v556_v3, 4  ;;  %v583_v59 = vld [vmem:[%s1130_s30 + $0x1d] sm:$0x1] }
  0x62   : > { %v510_v9 = vrot.slane %v509_v62, 1  ;;  %v534_v10 = vrot.slane %v533_v63, 2  ;;  %v546_v11 = vadd.s32 %v545_v2, %v543_v56  ;;  %v569_v15 = vsel %vm568_vm12, 1, %v1006_v0 }
  0x63   : > { %487 = vst [vmem:[%s1130_s30 + $0x15] sm:$0x1] %v486_v4  ;;  %v523_v13 = vrot.slane %v522_v6, 1  ;;  %v559_v14 = vadd.s32 %v558_v7, %v556_v3  ;;  %vm581_vm13 = vcmp.le.f32.partialorder %v1140_v1, %v852_v61  ;;  %v571_v20 = vrot.slane %v569_v15, 4  ;;  %v609_v7 = vld [vmem:[%s1130_s30 + $0x1f] sm:$0x1] }
  0x64   : > { %500 = vst [vmem:[%s1130_s30 + $0x16] sm:$0x1] %v499_v5  ;;  %v511_v16 = vadd.s32 %v510_v9, %v509_v62  ;;  %v535_v18 = vadd.s32 %v534_v10, %v533_v63  ;;  %v547_v19 = vrot.slane %v546_v11, 2  ;;  %v582_v23 = vsel %vm581_vm13, 1, %v1006_v0  ;;  %v596_v63 = vld [vmem:[%s1130_s30 + $0x1e] sm:$0x1] }
  0x65   : > { %v524_v21 = vadd.s32 %v523_v13, %v522_v6  ;;  %v560_v22 = vrot.slane %v559_v14, 2  ;;  %vm594_vm14 = vcmp.le.f32.partialorder %v1140_v1, %v853_v8  ;;  %v572_v28 = vadd.s32 %v571_v20, %v569_v15 }
  0x66   : > { %v512_v25 = vadd.s32 %v511_v16, %v505_v12  ;;  %v536_v26 = vrot.slane %v535_v18, 1  ;;  %v548_v27 = vadd.s32 %v547_v19, %v546_v11  ;;  %v584_v32 = vrot.slane %v582_v23, 4 }
  0x67   : > { %v525_v29 = vadd.s32 %v524_v21, %v518_v17  ;;  %v561_v31 = vadd.s32 %v560_v22, %v559_v14  ;;  %v595_v33 = vsel %vm594_vm14, 1, %v1006_v0  ;;  %v573_v36 = vrot.slane %v572_v28, 2 }
  0x68   : > { %513 = vst [vmem:[%s1130_s30 + $0x17] sm:$0x1] %v512_v25  ;;  %v537_v34 = vadd.s32 %v536_v26, %v535_v18  ;;  %v549_v35 = vrot.slane %v548_v27, 1  ;;  %v597_v37 = vrot.slane %v595_v33, 4  ;;  %v585_v40 = vadd.s32 %v584_v32, %v582_v23 }
  0x69   : > { %526 = vst [vmem:[%s1130_s30 + $0x18] sm:$0x1] %v525_v29  ;;  %v562_v39 = vrot.slane %v561_v31, 1  ;;  %vm607_vm15 = vcmp.le.f32.partialorder %v1140_v1, %v854_v24  ;;  %v574_v44 = vadd.s32 %v573_v36, %v572_v28 }
  0x6a   : > { %v538_v41 = vadd.s32 %v537_v34, %v531_v30  ;;  %v550_v42 = vadd.s32 %v549_v35, %v548_v27  ;;  %v598_v45 = vadd.s32 %v597_v37, %v595_v33  ;;  %v586_v47 = vrot.slane %v585_v40, 2 }
  0x6b   : > { %v563_v46 = vadd.s32 %v562_v39, %v561_v31  ;;  %v608_v48 = vsel %vm607_vm15, 1, %v1006_v0  ;;  %v575_v50 = vrot.slane %v574_v44, 1 }
  0x6c   : > { %539 = vst [vmem:[%s1130_s30 + $0x19] sm:$0x1] %v538_v41  ;;  %v551_v49 = vadd.s32 %v550_v42, %v544_v38  ;;  %v599_v51 = vrot.slane %v598_v45, 2  ;;  %v610_v52 = vrot.slane %v608_v48, 4  ;;  %v587_v54 = vadd.s32 %v586_v47, %v585_v40 }
  0x6d   : > { %v564_v1 = vadd.s32 %v563_v46, %v557_v43  ;;  %v576_v55 = vadd.s32 %v575_v50, %v574_v44 }
  0x6e   : > { %552 = vst [vmem:[%s1130_s30 + $0x1a] sm:$0x1] %v551_v49  ;;  %v600_v56 = vadd.s32 %v599_v51, %v598_v45  ;;  %v611_v57 = vadd.s32 %v610_v52, %v608_v48  ;;  %v588_v58 = vrot.slane %v587_v54, 1 }
  0x6f   : > { %565 = vst [vmem:[%s1130_s30 + $0x1b] sm:$0x1] %v564_v1  ;;  %v577_v0 = vadd.s32 %v576_v55, %v570_v53 }
  0x70   : > { %v601_v60 = vrot.slane %v600_v56, 1  ;;  %v612_v61 = vrot.slane %v611_v57, 2  ;;  %v589_v62 = vadd.s32 %v588_v58, %v587_v54 }
  0x71   : > { %578 = vst [vmem:[%s1130_s30 + $0x1c] sm:$0x1] %v577_v0 }
  0x72   : > { %v602_v2 = vadd.s32 %v601_v60, %v600_v56  ;;  %v613_v3 = vadd.s32 %v612_v61, %v611_v57  ;;  %v590_v4 = vadd.s32 %v589_v62, %v583_v59 }
  0x74   : > { %v603_v5 = vadd.s32 %v602_v2, %v596_v63  ;;  %v614_v6 = vrot.slane %v613_v3, 1  ;;  %591 = vst [vmem:[%s1130_s30 + $0x1d] sm:$0x1] %v590_v4 }
  0x76   : > { %604 = vst [vmem:[%s1130_s30 + $0x1e] sm:$0x1] %v603_v5  ;;  %v615_v8 = vadd.s32 %v614_v6, %v613_v3 }
  0x78   : > { %v616_v9 = vadd.s32 %v615_v8, %v609_v7 }
  0x7a   : > { %617 = vst [vmem:[%s1130_s30 + $0x1f] sm:$0x1] %v616_v9 }
  0x7b   : > { %942 = shalt.err (!%p939_p13)
}
  0x7c   : > { %s1007_s24 = smov 128   ;;  %s1008_s27 = smov 8  }
  0x7d   : > { %751 = dma.vmem_to_hbm [thread:$0]  (%p1095_p4), %s632_s12, 512, %s634_s8, %s619_s17, %s1007_s24, %s1007_s24, %s1008_s27  }
  0x7e PF: > { %s648_s28 = sand.u32 1, %s981_s9   ;;  %p762_p0 = pnand %p732_p6, %p1103_p7 }
  0x7f   : > { %s649_s20 = scalar_lea.sflag [#allocation4], %s648_s28 }
  0x80   : > { %p763_p2 = pneg %p762_p0 }
  0x82   : > { %976 = dma.done.wait (%p763_p2), %s649_s20, 512  }
  0x83   : > { %978 = vsyncadd (%p763_p2), %s649_s20, 4294966784  ;;  %s19_s14 = sadd.s32 1, %s1001_s14   ;;  %s1318_s9 = smov %s985_s10 }
  0x84   : > { %p16_p5 = scmp.ge.s32.totalorder %s19_s14, 4   ;;  %s1319_s10 = smov %s989_s11 }
  0x85   : > { %s1320_s11 = smov %s1101_s4  ;;  %s1321_s12 = smov %s997_s13 }
  0x86   : > { %s1322_s13 = smov %s1324_s26  ;;  %18 = sbr.rel (!%p16_p5) target bundleno = 7 (0x7), region = 82 }
  0x8b   :  { %655 = vsyncpa [#allocation3], 1 }
  0x8c   :  { %657 = vsyncpa [#allocation3 + $0x1], 1 }
  0x8d   :  { %658 = vsyncpa [#allocation6], 1 }
  0x8e   :  { %660 = vsyncpa [#allocation6 + $0x1], 1 }
  0x8f   :  { %661 = vsyncpa [#allocation4], 1 }
  0x90   :  { %663 = vsyncpa [#allocation4 + $0x1], 1 }

</bundles_post_ra>
